<compile_context>
chip_gen: v7x
topology: tpu7x:2x2x1
jax: 0.10.0
libtpu: 0.0.40
codegen_flags: <defaults>
</compile_context>

<pallas_src>
import functools

import jax
import jax.numpy as jnp
import numpy as np
from jax import lax
from jax.experimental import pallas as pl
from jax.experimental.pallas import tpu as pltpu


def _softmax_last(s):
    """Softmax along the last axis; one reciprocal per row (EUP), reused via broadcast."""
    s = s - jnp.max(s, axis=-1, keepdims=True)
    e = jnp.exp(s)
    return e * pl.reciprocal(jnp.sum(e, axis=-1, keepdims=True), approx=False)


def _mhsa_kernel(lam_ref, x_ref, adj_ref, mat_ref,
                 wq_ref, bq_ref, wk_ref, bk_ref,
                 wa_ref, ba_ref, wm_ref, bm_ref,
                 o_ref, *, H, Dh, N, C, TB):
    # One grid step == TB batch elements (molecules).
    x2 = x_ref[...].reshape(TB * N, C)        # (TB*N, C)
    adj2 = adj_ref[...].reshape(TB * N, N)    # (TB*N, N)
    mat2 = mat_ref[...].reshape(TB * N, N)    # (TB*N, N)

    # Q / K projections as single large (TB*N, C) @ (C, C) MXU matmuls.
    # The PyTorch module uses self.k(x) for BOTH k and v, so no V projection.
    q = (jnp.dot(x2, wq_ref[...], preferred_element_type=jnp.float32)
         + bq_ref[...]).reshape(TB, N, C)
    k = (jnp.dot(x2, wk_ref[...], preferred_element_type=jnp.float32)
         + bk_ref[...]).reshape(TB, N, C)

    scale = jnp.float32(C) ** -0.5

    outs = []
    for h in range(H):  # static unroll over heads (H is small)
        qh = q[:, :, h * Dh:(h + 1) * Dh]      # (TB, N, Dh)
        kh = k[:, :, h * Dh:(h + 1) * Dh]      # (TB, N, Dh) -- also v_h

        # s = qh @ kh^T, batched over TB; contracted dims given directly so the
        # MXU consumes kh without an explicit XLU transpose.
        s = lax.dot_general(
            qh, kh,
            dimension_numbers=(((2,), (2,)), ((0,), (0,))),
            preferred_element_type=jnp.float32) * scale
        attn = _softmax_last(s)                # (TB, N, N)

        # adj / matrix head projections computed in-loop from static column
        # slices of the weight refs -> live intermediates stay (TB*N, N).
        a_h = (jnp.dot(adj2, wa_ref[:, h * N:(h + 1) * N],
                       preferred_element_type=jnp.float32)
               + ba_ref[:, h * N:(h + 1) * N])
        m_h = (jnp.dot(mat2, wm_ref[:, h * N:(h + 1) * N],
                       preferred_element_type=jnp.float32)
               + bm_ref[:, h * N:(h + 1) * N])
        ah = _softmax_last(a_h).reshape(TB, N, N)
        mh = _softmax_last(m_h).reshape(TB, N, N)

        l0 = lam_ref[h, 0]
        l1 = lam_ref[h, 1]
        l2 = lam_ref[h, 2]
        comb = attn * l0 + ah * l1 + mh * l2   # (TB, N, N)

        # out_h = comb @ v_h, batched over TB.
        out_h = lax.dot_general(
            comb, kh,
            dimension_numbers=(((2,), (1,)), ((0,), (0,))),
            preferred_element_type=jnp.float32)   # (TB, N, Dh)
        outs.append(out_h)

    # Lane-dense output: concatenate heads in registers, single full store.
    o_ref[...] = jnp.concatenate(outs, axis=-1).astype(o_ref.dtype)


def _pick_tb(B, N, C):
    """Largest divisor of B whose double-buffered blocks stay well under the
    smallest default scoped-VMEM budget (v5e 16 MiB / v7x 32 MiB)."""
    per_b = 4 * (2 * N * C + 2 * N * N) * 2   # x+out, adj+mat, f32, 2x buffered
    budget = 4 * 1024 * 1024
    tb = max(1, min(B, budget // max(per_b, 1)))
    while B % tb:
        tb -= 1
    return tb


def molecule_mhsa(x, adj, mat, wq, bq, wk, bk, wa, ba, wm, bm, lam, *, tb=None):
    B, N, C = x.shape
    H = lam.shape[0]
    Dh = C // H
    NH = N * H
    assert C % H == 0
    assert bq.shape == (1, C) and bk.shape == (1, C)
    assert ba.shape == (1, NH) and bm.shape == (1, NH)

    if tb is None:
        tb = _pick_tb(B, N, C)
    assert B % tb == 0

    kernel = functools.partial(_mhsa_kernel, H=H, Dh=Dh, N=N, C=C, TB=tb)

    flops = B * (4 * N * C * C          # q, k projections
                 + 4 * N * N * NH       # adj + matrix projections
                 + 4 * N * N * C)       # qk^T and attn@v over all heads
    transcendentals = B * 3 * H * N * N
    bytes_accessed = 4 * (B * (2 * N * C + 2 * N * N)
                          + 2 * C * C + 2 * N * NH + 2 * C + 2 * NH)

    return pl.pallas_call(
        kernel,
        out_shape=jax.ShapeDtypeStruct((B, N, C), x.dtype),
        grid=(B // tb,),
        in_specs=[
            # softmaxed lambdas (H, 3) live in SMEM, read as scalars.
            pl.BlockSpec(memory_space=pltpu.MemorySpace.SMEM),
            pl.BlockSpec((tb, N, C), lambda b: (b, 0, 0)),
            pl.BlockSpec((tb, N, N), lambda b: (b, 0, 0)),
            pl.BlockSpec((tb, N, N), lambda b: (b, 0, 0)),
            pl.BlockSpec((C, C), lambda b: (0, 0)),
            pl.BlockSpec((1, C), lambda b: (0, 0)),
            pl.BlockSpec((C, C), lambda b: (0, 0)),
            pl.BlockSpec((1, C), lambda b: (0, 0)),
            pl.BlockSpec((N, NH), lambda b: (0, 0)),
            pl.BlockSpec((1, NH), lambda b: (0, 0)),
            pl.BlockSpec((N, NH), lambda b: (0, 0)),
            pl.BlockSpec((1, NH), lambda b: (0, 0)),
        ],
        out_specs=pl.BlockSpec((tb, N, C), lambda b: (b, 0, 0)),
        compiler_params=pltpu.CompilerParams(dimension_semantics=("parallel",)),
        cost_estimate=pl.CostEstimate(flops=flops,
                                      transcendentals=transcendentals,
                                      bytes_accessed=bytes_accessed),
    )(lam, x, adj, mat, wq, bq, wk, bk, wa, ba, wm, bm)


def reference(x, adj, mat, wq, bq, wk, bk, wa, ba, wm, bm, lambdas_raw):
    """Pure-JAX port of the PyTorch forward (for validation)."""
    B, N, C = x.shape
    H = lambdas_raw.shape[0]
    Dh = C // H

    q = (x @ wq + bq).reshape(B, N, H, Dh).transpose(0, 2, 1, 3)
    k = (x @ wk + bk).reshape(B, N, H, Dh).transpose(0, 2, 1, 3)
    v = k  # module uses self.k(x) for v

    attn = jax.nn.softmax(
        jnp.einsum('bhqd,bhkd->bhqk', q, k) * (C ** -0.5), axis=-1)

    ap = jax.nn.softmax(
        (adj @ wa + ba).reshape(B, N, H, N).transpose(0, 2, 1, 3), axis=-1)
    mp = jax.nn.softmax(
        (mat @ wm + bm).reshape(B, N, H, N).transpose(0, 2, 1, 3), axis=-1)

    lam = jax.nn.softmax(lambdas_raw, axis=-1)  # (H, 3)
    comb = (attn * lam[None, :, 0, None, None]
            + ap * lam[None, :, 1, None, None]
            + mp * lam[None, :, 2, None, None])

    out = jnp.einsum('bhqk,bhkd->bhqd', comb, v)
    return out.transpose(0, 2, 1, 3).reshape(B, N, C)


if __name__ == "__main__":
    B, N, C, H = 2, 8, 32, 4   # dim=32, num_heads=4, N=8 nodes

    key = jax.random.PRNGKey(0)
    ks = jax.random.split(key, 12)

    x = jax.random.normal(ks[0], (B, N, C), jnp.float32)
    adj = jax.random.normal(ks[1], (B, N, N), jnp.float32)
    mat = jax.random.normal(ks[2], (B, N, N), jnp.float32)

    # Parameters (deterministic init; weights already stored as (in, out)).
    wq = jax.random.normal(ks[3], (C, C), jnp.float32) * 0.1
    bq = jax.random.normal(ks[4], (C,), jnp.float32) * 0.1
    wk = jax.random.normal(ks[5], (C, C), jnp.float32) * 0.1
    bk = jax.random.normal(ks[6], (C,), jnp.float32) * 0.1
    wa = jax.random.normal(ks[7], (N, N * H), jnp.float32) * 0.1
    ba = jax.random.normal(ks[8], (N * H,), jnp.float32) * 0.1
    wm = jax.random.normal(ks[9], (N, N * H), jnp.float32) * 0.1
    bm = jax.random.normal(ks[10], (N * H,), jnp.float32) * 0.1
    # lambdas initialized exactly like the module: [[1., 0., 0.]] * num_heads
    lambdas_raw = jnp.tile(jnp.array([[1.0, 0.0, 0.0]], jnp.float32), (H, 1))

    # Glue: softmax-normalize lambdas, reshape biases to 2-D rows for the kernel.
    lam = jax.nn.softmax(lambdas_raw, axis=-1)          # (H, 3)
    bq2 = bq.reshape(1, C)
    bk2 = bk.reshape(1, C)
    ba2 = ba.reshape(1, N * H)
    bm2 = bm.reshape(1, N * H)

    out = molecule_mhsa(x, adj, mat, wq, bq2, wk, bk2, wa, ba2, wm, bm2, lam)
    out = jax.block_until_ready(out)

    ref = reference(x, adj, mat, wq, bq, wk, bk, wa, ba, wm, bm, lambdas_raw)
    np.testing.assert_allclose(np.asarray(out), np.asarray(ref),
                               rtol=1e-5, atol=1e-5)

    print("KERNEL_OK")
</pallas_src>

<mosaic_0001>
module attributes {stable_mosaic.version = 11 : i64} {
  func.func @_mhsa_kernel(%arg0: i32, %arg1: memref<4x3xf32, #tpu.memory_space<smem>>, %arg2: memref<2x8x32xf32, #tpu.memory_space<vmem>>, %arg3: memref<2x8x8xf32, #tpu.memory_space<vmem>>, %arg4: memref<2x8x8xf32, #tpu.memory_space<vmem>>, %arg5: memref<32x32xf32, #tpu.memory_space<vmem>>, %arg6: memref<1x32xf32, #tpu.memory_space<vmem>>, %arg7: memref<32x32xf32, #tpu.memory_space<vmem>>, %arg8: memref<1x32xf32, #tpu.memory_space<vmem>>, %arg9: memref<8x32xf32, #tpu.memory_space<vmem>>, %arg10: memref<1x32xf32, #tpu.memory_space<vmem>>, %arg11: memref<8x32xf32, #tpu.memory_space<vmem>>, %arg12: memref<1x32xf32, #tpu.memory_space<vmem>>, %arg13: memref<2x8x32xf32, #tpu.memory_space<vmem>>) attributes {dimension_semantics = [#tpu.dimension_semantics<parallel>], iteration_bounds = array<i64: 1>, scalar_prefetch = 0 : i64, scratch_operands = 0 : i64, tpu.core_type = #tpu.core_type<tc>, window_params = [{transform_indices = @transform_0, window_bounds = array<i64: 4, 3>}, {transform_indices = @transform_1, window_bounds = array<i64: 2, 8, 32>}, {transform_indices = @transform_2, window_bounds = array<i64: 2, 8, 8>}, {transform_indices = @transform_3, window_bounds = array<i64: 2, 8, 8>}, {pipeline_mode = #tpu.pipeline_mode<synchronous>, transform_indices = @transform_4, window_bounds = array<i64: 32, 32>}, {pipeline_mode = #tpu.pipeline_mode<synchronous>, transform_indices = @transform_5, window_bounds = array<i64: 1, 32>}, {pipeline_mode = #tpu.pipeline_mode<synchronous>, transform_indices = @transform_6, window_bounds = array<i64: 32, 32>}, {pipeline_mode = #tpu.pipeline_mode<synchronous>, transform_indices = @transform_7, window_bounds = array<i64: 1, 32>}, {pipeline_mode = #tpu.pipeline_mode<synchronous>, transform_indices = @transform_8, window_bounds = array<i64: 8, 32>}, {pipeline_mode = #tpu.pipeline_mode<synchronous>, transform_indices = @transform_9, window_bounds = array<i64: 1, 32>}, {pipeline_mode = #tpu.pipeline_mode<synchronous>, transform_indices = @transform_10, window_bounds = array<i64: 8, 32>}, {pipeline_mode = #tpu.pipeline_mode<synchronous>, transform_indices = @transform_11, window_bounds = array<i64: 1, 32>}, {transform_indices = @transform_12, window_bounds = array<i64: 2, 8, 32>}]} {
    %c0 = arith.constant 0 : index
    %c0_0 = arith.constant 0 : index
    %c0_1 = arith.constant 0 : index
    %0 = vector.load %arg2[%c0, %c0_0, %c0_1] : memref<2x8x32xf32, #tpu.memory_space<vmem>>, vector<2x8x32xf32>
    %1 = vector.shape_cast %0 : vector<2x8x32xf32> to vector<16x32xf32>
    %c0_2 = arith.constant 0 : index
    %c0_3 = arith.constant 0 : index
    %c0_4 = arith.constant 0 : index
    %2 = vector.load %arg3[%c0_2, %c0_3, %c0_4] : memref<2x8x8xf32, #tpu.memory_space<vmem>>, vector<2x8x8xf32>
    %3 = vector.shape_cast %2 : vector<2x8x8xf32> to vector<16x8xf32>
    %c0_5 = arith.constant 0 : index
    %c0_6 = arith.constant 0 : index
    %c0_7 = arith.constant 0 : index
    %4 = vector.load %arg4[%c0_5, %c0_6, %c0_7] : memref<2x8x8xf32, #tpu.memory_space<vmem>>, vector<2x8x8xf32>
    %5 = vector.shape_cast %4 : vector<2x8x8xf32> to vector<16x8xf32>
    %c0_8 = arith.constant 0 : index
    %c0_9 = arith.constant 0 : index
    %6 = vector.load %arg5[%c0_8, %c0_9] : memref<32x32xf32, #tpu.memory_space<vmem>>, vector<32x32xf32>
    %cst = arith.constant dense<0.000000e+00> : vector<16x32xf32>
    %7 = tpu.matmul %1, %6, %cst {dimension_numbers = #tpu.dot_dimension_numbers<[1], [0], [0], [1], [0, 0, 1, 1], [], []>} : vector<16x32xf32>, vector<32x32xf32>, vector<16x32xf32> -> vector<16x32xf32>
    %c0_10 = arith.constant 0 : index
    %c0_11 = arith.constant 0 : index
    %8 = vector.load %arg6[%c0_10, %c0_11] : memref<1x32xf32, #tpu.memory_space<vmem>>, vector<1x32xf32>
    %9 = vector.broadcast %8 : vector<1x32xf32> to vector<16x32xf32>
    %10 = arith.addf %7, %9 : vector<16x32xf32>
    %11 = vector.shape_cast %10 : vector<16x32xf32> to vector<2x8x32xf32>
    %c0_12 = arith.constant 0 : index
    %c0_13 = arith.constant 0 : index
    %12 = vector.load %arg7[%c0_12, %c0_13] : memref<32x32xf32, #tpu.memory_space<vmem>>, vector<32x32xf32>
    %cst_14 = arith.constant dense<0.000000e+00> : vector<16x32xf32>
    %13 = tpu.matmul %1, %12, %cst_14 {dimension_numbers = #tpu.dot_dimension_numbers<[1], [0], [0], [1], [0, 0, 1, 1], [], []>} : vector<16x32xf32>, vector<32x32xf32>, vector<16x32xf32> -> vector<16x32xf32>
    %c0_15 = arith.constant 0 : index
    %c0_16 = arith.constant 0 : index
    %14 = vector.load %arg8[%c0_15, %c0_16] : memref<1x32xf32, #tpu.memory_space<vmem>>, vector<1x32xf32>
    %15 = vector.broadcast %14 : vector<1x32xf32> to vector<16x32xf32>
    %16 = arith.addf %13, %15 : vector<16x32xf32>
    %17 = vector.shape_cast %16 : vector<16x32xf32> to vector<2x8x32xf32>
    %cst_17 = arith.constant 3.200000e+01 : f32
    %cst_18 = arith.constant -5.000000e-01 : f32
    %18 = math.powf %cst_17, %cst_18 : f32
    %19 = vector.extract_strided_slice %11 {offsets = [0, 0, 0], sizes = [2, 8, 8], strides = [1, 1, 1]} : vector<2x8x32xf32> to vector<2x8x8xf32>
    %20 = vector.extract_strided_slice %17 {offsets = [0, 0, 0], sizes = [2, 8, 8], strides = [1, 1, 1]} : vector<2x8x32xf32> to vector<2x8x8xf32>
    %cst_19 = arith.constant dense<0.000000e+00> : vector<2x8x8xf32>
    %21 = tpu.matmul %19, %20, %cst_19 {dimension_numbers = #tpu.dot_dimension_numbers<[2], [2], [1], [1], [0, 0, 0, 1, 1, 1], [0], [0]>} : vector<2x8x8xf32>, vector<2x8x8xf32>, vector<2x8x8xf32> -> vector<2x8x8xf32>
    %22 = vector.broadcast %18 : f32 to vector<2x8x8xf32>
    %23 = arith.mulf %21, %22 : vector<2x8x8xf32>
    %cst_20 = arith.constant dense<0xFF800000> : vector<2x8xf32>
    %24 = vector.multi_reduction <maximumf>, %23, %cst_20 [2] : vector<2x8x8xf32> to vector<2x8xf32>
    %25 = vector.shape_cast %24 : vector<2x8xf32> to vector<2x8x1xf32>
    %26 = vector.broadcast %25 : vector<2x8x1xf32> to vector<2x8x8xf32>
    %27 = arith.subf %23, %26 : vector<2x8x8xf32>
    %28 = math.exp %27 : vector<2x8x8xf32>
    %cst_21 = arith.constant dense<0.000000e+00> : vector<2x8xf32>
    %29 = vector.multi_reduction <add>, %28, %cst_21 [2] : vector<2x8x8xf32> to vector<2x8xf32>
    %30 = vector.shape_cast %29 : vector<2x8xf32> to vector<2x8x1xf32>
    %31 = tpu.reciprocal %30 : vector<2x8x1xf32> -> vector<2x8x1xf32>
    %32 = vector.broadcast %31 : vector<2x8x1xf32> to vector<2x8x8xf32>
    %33 = arith.mulf %28, %32 : vector<2x8x8xf32>
    %c0_22 = arith.constant 0 : index
    %c0_23 = arith.constant 0 : index
    %34 = vector.load %arg9[%c0_22, %c0_23] : memref<8x32xf32, #tpu.memory_space<vmem>>, vector<8x8xf32>
    %cst_24 = arith.constant dense<0.000000e+00> : vector<16x8xf32>
    %35 = tpu.matmul %3, %34, %cst_24 {dimension_numbers = #tpu.dot_dimension_numbers<[1], [0], [0], [1], [0, 0, 1, 1], [], []>} : vector<16x8xf32>, vector<8x8xf32>, vector<16x8xf32> -> vector<16x8xf32>
    %c0_25 = arith.constant 0 : index
    %c0_26 = arith.constant 0 : index
    %36 = vector.load %arg10[%c0_25, %c0_26] : memref<1x32xf32, #tpu.memory_space<vmem>>, vector<1x8xf32>
    %37 = vector.broadcast %36 : vector<1x8xf32> to vector<16x8xf32>
    %38 = arith.addf %35, %37 : vector<16x8xf32>
    %c0_27 = arith.constant 0 : index
    %c0_28 = arith.constant 0 : index
    %39 = vector.load %arg11[%c0_27, %c0_28] : memref<8x32xf32, #tpu.memory_space<vmem>>, vector<8x8xf32>
    %cst_29 = arith.constant dense<0.000000e+00> : vector<16x8xf32>
    %40 = tpu.matmul %5, %39, %cst_29 {dimension_numbers = #tpu.dot_dimension_numbers<[1], [0], [0], [1], [0, 0, 1, 1], [], []>} : vector<16x8xf32>, vector<8x8xf32>, vector<16x8xf32> -> vector<16x8xf32>
    %c0_30 = arith.constant 0 : index
    %c0_31 = arith.constant 0 : index
    %41 = vector.load %arg12[%c0_30, %c0_31] : memref<1x32xf32, #tpu.memory_space<vmem>>, vector<1x8xf32>
    %42 = vector.broadcast %41 : vector<1x8xf32> to vector<16x8xf32>
    %43 = arith.addf %40, %42 : vector<16x8xf32>
    %cst_32 = arith.constant dense<0xFF800000> : vector<16xf32>
    %44 = vector.multi_reduction <maximumf>, %38, %cst_32 [1] : vector<16x8xf32> to vector<16xf32>
    %45 = vector.shape_cast %44 : vector<16xf32> to vector<16x1xf32>
    %46 = vector.broadcast %45 : vector<16x1xf32> to vector<16x8xf32>
    %47 = arith.subf %38, %46 : vector<16x8xf32>
    %48 = math.exp %47 : vector<16x8xf32>
    %cst_33 = arith.constant dense<0.000000e+00> : vector<16xf32>
    %49 = vector.multi_reduction <add>, %48, %cst_33 [1] : vector<16x8xf32> to vector<16xf32>
    %50 = vector.shape_cast %49 : vector<16xf32> to vector<16x1xf32>
    %51 = tpu.reciprocal %50 : vector<16x1xf32> -> vector<16x1xf32>
    %52 = vector.broadcast %51 : vector<16x1xf32> to vector<16x8xf32>
    %53 = arith.mulf %48, %52 : vector<16x8xf32>
    %54 = vector.shape_cast %53 : vector<16x8xf32> to vector<2x8x8xf32>
    %cst_34 = arith.constant dense<0xFF800000> : vector<16xf32>
    %55 = vector.multi_reduction <maximumf>, %43, %cst_34 [1] : vector<16x8xf32> to vector<16xf32>
    %56 = vector.shape_cast %55 : vector<16xf32> to vector<16x1xf32>
    %57 = vector.broadcast %56 : vector<16x1xf32> to vector<16x8xf32>
    %58 = arith.subf %43, %57 : vector<16x8xf32>
    %59 = math.exp %58 : vector<16x8xf32>
    %cst_35 = arith.constant dense<0.000000e+00> : vector<16xf32>
    %60 = vector.multi_reduction <add>, %59, %cst_35 [1] : vector<16x8xf32> to vector<16xf32>
    %61 = vector.shape_cast %60 : vector<16xf32> to vector<16x1xf32>
    %62 = tpu.reciprocal %61 : vector<16x1xf32> -> vector<16x1xf32>
    %63 = vector.broadcast %62 : vector<16x1xf32> to vector<16x8xf32>
    %64 = arith.mulf %59, %63 : vector<16x8xf32>
    %65 = vector.shape_cast %64 : vector<16x8xf32> to vector<2x8x8xf32>
    %c0_36 = arith.constant 0 : index
    %c0_37 = arith.constant 0 : index
    %66 = memref.load %arg1[%c0_36, %c0_37] : memref<4x3xf32, #tpu.memory_space<smem>>
    %c0_38 = arith.constant 0 : index
    %c1 = arith.constant 1 : index
    %67 = memref.load %arg1[%c0_38, %c1] : memref<4x3xf32, #tpu.memory_space<smem>>
    %c0_39 = arith.constant 0 : index
    %c2 = arith.constant 2 : index
    %68 = memref.load %arg1[%c0_39, %c2] : memref<4x3xf32, #tpu.memory_space<smem>>
    %69 = vector.broadcast %66 : f32 to vector<2x8x8xf32>
    %70 = arith.mulf %33, %69 : vector<2x8x8xf32>
    %71 = vector.broadcast %67 : f32 to vector<2x8x8xf32>
    %72 = arith.mulf %54, %71 : vector<2x8x8xf32>
    %73 = arith.addf %70, %72 : vector<2x8x8xf32>
    %74 = vector.broadcast %68 : f32 to vector<2x8x8xf32>
    %75 = arith.mulf %65, %74 : vector<2x8x8xf32>
    %76 = arith.addf %73, %75 : vector<2x8x8xf32>
    %cst_40 = arith.constant dense<0.000000e+00> : vector<2x8x8xf32>
    %77 = tpu.matmul %76, %20, %cst_40 {dimension_numbers = #tpu.dot_dimension_numbers<[2], [1], [1], [2], [0, 0, 0, 1, 1, 2], [0], [0]>} : vector<2x8x8xf32>, vector<2x8x8xf32>, vector<2x8x8xf32> -> vector<2x8x8xf32>
    %78 = vector.extract_strided_slice %11 {offsets = [0, 0, 8], sizes = [2, 8, 8], strides = [1, 1, 1]} : vector<2x8x32xf32> to vector<2x8x8xf32>
    %79 = vector.extract_strided_slice %17 {offsets = [0, 0, 8], sizes = [2, 8, 8], strides = [1, 1, 1]} : vector<2x8x32xf32> to vector<2x8x8xf32>
    %cst_41 = arith.constant dense<0.000000e+00> : vector<2x8x8xf32>
    %80 = tpu.matmul %78, %79, %cst_41 {dimension_numbers = #tpu.dot_dimension_numbers<[2], [2], [1], [1], [0, 0, 0, 1, 1, 1], [0], [0]>} : vector<2x8x8xf32>, vector<2x8x8xf32>, vector<2x8x8xf32> -> vector<2x8x8xf32>
    %81 = vector.broadcast %18 : f32 to vector<2x8x8xf32>
    %82 = arith.mulf %80, %81 : vector<2x8x8xf32>
    %cst_42 = arith.constant dense<0xFF800000> : vector<2x8xf32>
    %83 = vector.multi_reduction <maximumf>, %82, %cst_42 [2] : vector<2x8x8xf32> to vector<2x8xf32>
    %84 = vector.shape_cast %83 : vector<2x8xf32> to vector<2x8x1xf32>
    %85 = vector.broadcast %84 : vector<2x8x1xf32> to vector<2x8x8xf32>
    %86 = arith.subf %82, %85 : vector<2x8x8xf32>
    %87 = math.exp %86 : vector<2x8x8xf32>
    %cst_43 = arith.constant dense<0.000000e+00> : vector<2x8xf32>
    %88 = vector.multi_reduction <add>, %87, %cst_43 [2] : vector<2x8x8xf32> to vector<2x8xf32>
    %89 = vector.shape_cast %88 : vector<2x8xf32> to vector<2x8x1xf32>
    %90 = tpu.reciprocal %89 : vector<2x8x1xf32> -> vector<2x8x1xf32>
    %91 = vector.broadcast %90 : vector<2x8x1xf32> to vector<2x8x8xf32>
    %92 = arith.mulf %87, %91 : vector<2x8x8xf32>
    %c0_44 = arith.constant 0 : index
    %c8 = arith.constant 8 : index
    %93 = vector.load %arg9[%c0_44, %c8] : memref<8x32xf32, #tpu.memory_space<vmem>>, vector<8x8xf32>
    %cst_45 = arith.constant dense<0.000000e+00> : vector<16x8xf32>
    %94 = tpu.matmul %3, %93, %cst_45 {dimension_numbers = #tpu.dot_dimension_numbers<[1], [0], [0], [1], [0, 0, 1, 1], [], []>} : vector<16x8xf32>, vector<8x8xf32>, vector<16x8xf32> -> vector<16x8xf32>
    %c0_46 = arith.constant 0 : index
    %c8_47 = arith.constant 8 : index
    %95 = vector.load %arg10[%c0_46, %c8_47] : memref<1x32xf32, #tpu.memory_space<vmem>>, vector<1x8xf32>
    %96 = vector.broadcast %95 : vector<1x8xf32> to vector<16x8xf32>
    %97 = arith.addf %94, %96 : vector<16x8xf32>
    %c0_48 = arith.constant 0 : index
    %c8_49 = arith.constant 8 : index
    %98 = vector.load %arg11[%c0_48, %c8_49] : memref<8x32xf32, #tpu.memory_space<vmem>>, vector<8x8xf32>
    %cst_50 = arith.constant dense<0.000000e+00> : vector<16x8xf32>
    %99 = tpu.matmul %5, %98, %cst_50 {dimension_numbers = #tpu.dot_dimension_numbers<[1], [0], [0], [1], [0, 0, 1, 1], [], []>} : vector<16x8xf32>, vector<8x8xf32>, vector<16x8xf32> -> vector<16x8xf32>
    %c0_51 = arith.constant 0 : index
    %c8_52 = arith.constant 8 : index
    %100 = vector.load %arg12[%c0_51, %c8_52] : memref<1x32xf32, #tpu.memory_space<vmem>>, vector<1x8xf32>
    %101 = vector.broadcast %100 : vector<1x8xf32> to vector<16x8xf32>
    %102 = arith.addf %99, %101 : vector<16x8xf32>
    %cst_53 = arith.constant dense<0xFF800000> : vector<16xf32>
    %103 = vector.multi_reduction <maximumf>, %97, %cst_53 [1] : vector<16x8xf32> to vector<16xf32>
    %104 = vector.shape_cast %103 : vector<16xf32> to vector<16x1xf32>
    %105 = vector.broadcast %104 : vector<16x1xf32> to vector<16x8xf32>
    %106 = arith.subf %97, %105 : vector<16x8xf32>
    %107 = math.exp %106 : vector<16x8xf32>
    %cst_54 = arith.constant dense<0.000000e+00> : vector<16xf32>
    %108 = vector.multi_reduction <add>, %107, %cst_54 [1] : vector<16x8xf32> to vector<16xf32>
    %109 = vector.shape_cast %108 : vector<16xf32> to vector<16x1xf32>
    %110 = tpu.reciprocal %109 : vector<16x1xf32> -> vector<16x1xf32>
    %111 = vector.broadcast %110 : vector<16x1xf32> to vector<16x8xf32>
    %112 = arith.mulf %107, %111 : vector<16x8xf32>
    %113 = vector.shape_cast %112 : vector<16x8xf32> to vector<2x8x8xf32>
    %cst_55 = arith.constant dense<0xFF800000> : vector<16xf32>
    %114 = vector.multi_reduction <maximumf>, %102, %cst_55 [1] : vector<16x8xf32> to vector<16xf32>
    %115 = vector.shape_cast %114 : vector<16xf32> to vector<16x1xf32>
    %116 = vector.broadcast %115 : vector<16x1xf32> to vector<16x8xf32>
    %117 = arith.subf %102, %116 : vector<16x8xf32>
    %118 = math.exp %117 : vector<16x8xf32>
    %cst_56 = arith.constant dense<0.000000e+00> : vector<16xf32>
    %119 = vector.multi_reduction <add>, %118, %cst_56 [1] : vector<16x8xf32> to vector<16xf32>
    %120 = vector.shape_cast %119 : vector<16xf32> to vector<16x1xf32>
    %121 = tpu.reciprocal %120 : vector<16x1xf32> -> vector<16x1xf32>
    %122 = vector.broadcast %121 : vector<16x1xf32> to vector<16x8xf32>
    %123 = arith.mulf %118, %122 : vector<16x8xf32>
    %124 = vector.shape_cast %123 : vector<16x8xf32> to vector<2x8x8xf32>
    %c1_57 = arith.constant 1 : index
    %c0_58 = arith.constant 0 : index
    %125 = memref.load %arg1[%c1_57, %c0_58] : memref<4x3xf32, #tpu.memory_space<smem>>
    %c1_59 = arith.constant 1 : index
    %c1_60 = arith.constant 1 : index
    %126 = memref.load %arg1[%c1_59, %c1_60] : memref<4x3xf32, #tpu.memory_space<smem>>
    %c1_61 = arith.constant 1 : index
    %c2_62 = arith.constant 2 : index
    %127 = memref.load %arg1[%c1_61, %c2_62] : memref<4x3xf32, #tpu.memory_space<smem>>
    %128 = vector.broadcast %125 : f32 to vector<2x8x8xf32>
    %129 = arith.mulf %92, %128 : vector<2x8x8xf32>
    %130 = vector.broadcast %126 : f32 to vector<2x8x8xf32>
    %131 = arith.mulf %113, %130 : vector<2x8x8xf32>
    %132 = arith.addf %129, %131 : vector<2x8x8xf32>
    %133 = vector.broadcast %127 : f32 to vector<2x8x8xf32>
    %134 = arith.mulf %124, %133 : vector<2x8x8xf32>
    %135 = arith.addf %132, %134 : vector<2x8x8xf32>
    %cst_63 = arith.constant dense<0.000000e+00> : vector<2x8x8xf32>
    %136 = tpu.matmul %135, %79, %cst_63 {dimension_numbers = #tpu.dot_dimension_numbers<[2], [1], [1], [2], [0, 0, 0, 1, 1, 2], [0], [0]>} : vector<2x8x8xf32>, vector<2x8x8xf32>, vector<2x8x8xf32> -> vector<2x8x8xf32>
    %137 = vector.extract_strided_slice %11 {offsets = [0, 0, 16], sizes = [2, 8, 8], strides = [1, 1, 1]} : vector<2x8x32xf32> to vector<2x8x8xf32>
    %138 = vector.extract_strided_slice %17 {offsets = [0, 0, 16], sizes = [2, 8, 8], strides = [1, 1, 1]} : vector<2x8x32xf32> to vector<2x8x8xf32>
    %cst_64 = arith.constant dense<0.000000e+00> : vector<2x8x8xf32>
    %139 = tpu.matmul %137, %138, %cst_64 {dimension_numbers = #tpu.dot_dimension_numbers<[2], [2], [1], [1], [0, 0, 0, 1, 1, 1], [0], [0]>} : vector<2x8x8xf32>, vector<2x8x8xf32>, vector<2x8x8xf32> -> vector<2x8x8xf32>
    %140 = vector.broadcast %18 : f32 to vector<2x8x8xf32>
    %141 = arith.mulf %139, %140 : vector<2x8x8xf32>
    %cst_65 = arith.constant dense<0xFF800000> : vector<2x8xf32>
    %142 = vector.multi_reduction <maximumf>, %141, %cst_65 [2] : vector<2x8x8xf32> to vector<2x8xf32>
    %143 = vector.shape_cast %142 : vector<2x8xf32> to vector<2x8x1xf32>
    %144 = vector.broadcast %143 : vector<2x8x1xf32> to vector<2x8x8xf32>
    %145 = arith.subf %141, %144 : vector<2x8x8xf32>
    %146 = math.exp %145 : vector<2x8x8xf32>
    %cst_66 = arith.constant dense<0.000000e+00> : vector<2x8xf32>
    %147 = vector.multi_reduction <add>, %146, %cst_66 [2] : vector<2x8x8xf32> to vector<2x8xf32>
    %148 = vector.shape_cast %147 : vector<2x8xf32> to vector<2x8x1xf32>
    %149 = tpu.reciprocal %148 : vector<2x8x1xf32> -> vector<2x8x1xf32>
    %150 = vector.broadcast %149 : vector<2x8x1xf32> to vector<2x8x8xf32>
    %151 = arith.mulf %146, %150 : vector<2x8x8xf32>
    %c0_67 = arith.constant 0 : index
    %c16 = arith.constant 16 : index
    %152 = vector.load %arg9[%c0_67, %c16] : memref<8x32xf32, #tpu.memory_space<vmem>>, vector<8x8xf32>
    %cst_68 = arith.constant dense<0.000000e+00> : vector<16x8xf32>
    %153 = tpu.matmul %3, %152, %cst_68 {dimension_numbers = #tpu.dot_dimension_numbers<[1], [0], [0], [1], [0, 0, 1, 1], [], []>} : vector<16x8xf32>, vector<8x8xf32>, vector<16x8xf32> -> vector<16x8xf32>
    %c0_69 = arith.constant 0 : index
    %c16_70 = arith.constant 16 : index
    %154 = vector.load %arg10[%c0_69, %c16_70] : memref<1x32xf32, #tpu.memory_space<vmem>>, vector<1x8xf32>
    %155 = vector.broadcast %154 : vector<1x8xf32> to vector<16x8xf32>
    %156 = arith.addf %153, %155 : vector<16x8xf32>
    %c0_71 = arith.constant 0 : index
    %c16_72 = arith.constant 16 : index
    %157 = vector.load %arg11[%c0_71, %c16_72] : memref<8x32xf32, #tpu.memory_space<vmem>>, vector<8x8xf32>
    %cst_73 = arith.constant dense<0.000000e+00> : vector<16x8xf32>
    %158 = tpu.matmul %5, %157, %cst_73 {dimension_numbers = #tpu.dot_dimension_numbers<[1], [0], [0], [1], [0, 0, 1, 1], [], []>} : vector<16x8xf32>, vector<8x8xf32>, vector<16x8xf32> -> vector<16x8xf32>
    %c0_74 = arith.constant 0 : index
    %c16_75 = arith.constant 16 : index
    %159 = vector.load %arg12[%c0_74, %c16_75] : memref<1x32xf32, #tpu.memory_space<vmem>>, vector<1x8xf32>
    %160 = vector.broadcast %159 : vector<1x8xf32> to vector<16x8xf32>
    %161 = arith.addf %158, %160 : vector<16x8xf32>
    %cst_76 = arith.constant dense<0xFF800000> : vector<16xf32>
    %162 = vector.multi_reduction <maximumf>, %156, %cst_76 [1] : vector<16x8xf32> to vector<16xf32>
    %163 = vector.shape_cast %162 : vector<16xf32> to vector<16x1xf32>
    %164 = vector.broadcast %163 : vector<16x1xf32> to vector<16x8xf32>
    %165 = arith.subf %156, %164 : vector<16x8xf32>
    %166 = math.exp %165 : vector<16x8xf32>
    %cst_77 = arith.constant dense<0.000000e+00> : vector<16xf32>
    %167 = vector.multi_reduction <add>, %166, %cst_77 [1] : vector<16x8xf32> to vector<16xf32>
    %168 = vector.shape_cast %167 : vector<16xf32> to vector<16x1xf32>
    %169 = tpu.reciprocal %168 : vector<16x1xf32> -> vector<16x1xf32>
    %170 = vector.broadcast %169 : vector<16x1xf32> to vector<16x8xf32>
    %171 = arith.mulf %166, %170 : vector<16x8xf32>
    %172 = vector.shape_cast %171 : vector<16x8xf32> to vector<2x8x8xf32>
    %cst_78 = arith.constant dense<0xFF800000> : vector<16xf32>
    %173 = vector.multi_reduction <maximumf>, %161, %cst_78 [1] : vector<16x8xf32> to vector<16xf32>
    %174 = vector.shape_cast %173 : vector<16xf32> to vector<16x1xf32>
    %175 = vector.broadcast %174 : vector<16x1xf32> to vector<16x8xf32>
    %176 = arith.subf %161, %175 : vector<16x8xf32>
    %177 = math.exp %176 : vector<16x8xf32>
    %cst_79 = arith.constant dense<0.000000e+00> : vector<16xf32>
    %178 = vector.multi_reduction <add>, %177, %cst_79 [1] : vector<16x8xf32> to vector<16xf32>
    %179 = vector.shape_cast %178 : vector<16xf32> to vector<16x1xf32>
    %180 = tpu.reciprocal %179 : vector<16x1xf32> -> vector<16x1xf32>
    %181 = vector.broadcast %180 : vector<16x1xf32> to vector<16x8xf32>
    %182 = arith.mulf %177, %181 : vector<16x8xf32>
    %183 = vector.shape_cast %182 : vector<16x8xf32> to vector<2x8x8xf32>
    %c2_80 = arith.constant 2 : index
    %c0_81 = arith.constant 0 : index
    %184 = memref.load %arg1[%c2_80, %c0_81] : memref<4x3xf32, #tpu.memory_space<smem>>
    %c2_82 = arith.constant 2 : index
    %c1_83 = arith.constant 1 : index
    %185 = memref.load %arg1[%c2_82, %c1_83] : memref<4x3xf32, #tpu.memory_space<smem>>
    %c2_84 = arith.constant 2 : index
    %c2_85 = arith.constant 2 : index
    %186 = memref.load %arg1[%c2_84, %c2_85] : memref<4x3xf32, #tpu.memory_space<smem>>
    %187 = vector.broadcast %184 : f32 to vector<2x8x8xf32>
    %188 = arith.mulf %151, %187 : vector<2x8x8xf32>
    %189 = vector.broadcast %185 : f32 to vector<2x8x8xf32>
    %190 = arith.mulf %172, %189 : vector<2x8x8xf32>
    %191 = arith.addf %188, %190 : vector<2x8x8xf32>
    %192 = vector.broadcast %186 : f32 to vector<2x8x8xf32>
    %193 = arith.mulf %183, %192 : vector<2x8x8xf32>
    %194 = arith.addf %191, %193 : vector<2x8x8xf32>
    %cst_86 = arith.constant dense<0.000000e+00> : vector<2x8x8xf32>
    %195 = tpu.matmul %194, %138, %cst_86 {dimension_numbers = #tpu.dot_dimension_numbers<[2], [1], [1], [2], [0, 0, 0, 1, 1, 2], [0], [0]>} : vector<2x8x8xf32>, vector<2x8x8xf32>, vector<2x8x8xf32> -> vector<2x8x8xf32>
    %196 = vector.extract_strided_slice %11 {offsets = [0, 0, 24], sizes = [2, 8, 8], strides = [1, 1, 1]} : vector<2x8x32xf32> to vector<2x8x8xf32>
    %197 = vector.extract_strided_slice %17 {offsets = [0, 0, 24], sizes = [2, 8, 8], strides = [1, 1, 1]} : vector<2x8x32xf32> to vector<2x8x8xf32>
    %cst_87 = arith.constant dense<0.000000e+00> : vector<2x8x8xf32>
    %198 = tpu.matmul %196, %197, %cst_87 {dimension_numbers = #tpu.dot_dimension_numbers<[2], [2], [1], [1], [0, 0, 0, 1, 1, 1], [0], [0]>} : vector<2x8x8xf32>, vector<2x8x8xf32>, vector<2x8x8xf32> -> vector<2x8x8xf32>
    %199 = vector.broadcast %18 : f32 to vector<2x8x8xf32>
    %200 = arith.mulf %198, %199 : vector<2x8x8xf32>
    %cst_88 = arith.constant dense<0xFF800000> : vector<2x8xf32>
    %201 = vector.multi_reduction <maximumf>, %200, %cst_88 [2] : vector<2x8x8xf32> to vector<2x8xf32>
    %202 = vector.shape_cast %201 : vector<2x8xf32> to vector<2x8x1xf32>
    %203 = vector.broadcast %202 : vector<2x8x1xf32> to vector<2x8x8xf32>
    %204 = arith.subf %200, %203 : vector<2x8x8xf32>
    %205 = math.exp %204 : vector<2x8x8xf32>
    %cst_89 = arith.constant dense<0.000000e+00> : vector<2x8xf32>
    %206 = vector.multi_reduction <add>, %205, %cst_89 [2] : vector<2x8x8xf32> to vector<2x8xf32>
    %207 = vector.shape_cast %206 : vector<2x8xf32> to vector<2x8x1xf32>
    %208 = tpu.reciprocal %207 : vector<2x8x1xf32> -> vector<2x8x1xf32>
    %209 = vector.broadcast %208 : vector<2x8x1xf32> to vector<2x8x8xf32>
    %210 = arith.mulf %205, %209 : vector<2x8x8xf32>
    %c0_90 = arith.constant 0 : index
    %c24 = arith.constant 24 : index
    %211 = vector.load %arg9[%c0_90, %c24] : memref<8x32xf32, #tpu.memory_space<vmem>>, vector<8x8xf32>
    %cst_91 = arith.constant dense<0.000000e+00> : vector<16x8xf32>
    %212 = tpu.matmul %3, %211, %cst_91 {dimension_numbers = #tpu.dot_dimension_numbers<[1], [0], [0], [1], [0, 0, 1, 1], [], []>} : vector<16x8xf32>, vector<8x8xf32>, vector<16x8xf32> -> vector<16x8xf32>
    %c0_92 = arith.constant 0 : index
    %c24_93 = arith.constant 24 : index
    %213 = vector.load %arg10[%c0_92, %c24_93] : memref<1x32xf32, #tpu.memory_space<vmem>>, vector<1x8xf32>
    %214 = vector.broadcast %213 : vector<1x8xf32> to vector<16x8xf32>
    %215 = arith.addf %212, %214 : vector<16x8xf32>
    %c0_94 = arith.constant 0 : index
    %c24_95 = arith.constant 24 : index
    %216 = vector.load %arg11[%c0_94, %c24_95] : memref<8x32xf32, #tpu.memory_space<vmem>>, vector<8x8xf32>
    %cst_96 = arith.constant dense<0.000000e+00> : vector<16x8xf32>
    %217 = tpu.matmul %5, %216, %cst_96 {dimension_numbers = #tpu.dot_dimension_numbers<[1], [0], [0], [1], [0, 0, 1, 1], [], []>} : vector<16x8xf32>, vector<8x8xf32>, vector<16x8xf32> -> vector<16x8xf32>
    %c0_97 = arith.constant 0 : index
    %c24_98 = arith.constant 24 : index
    %218 = vector.load %arg12[%c0_97, %c24_98] : memref<1x32xf32, #tpu.memory_space<vmem>>, vector<1x8xf32>
    %219 = vector.broadcast %218 : vector<1x8xf32> to vector<16x8xf32>
    %220 = arith.addf %217, %219 : vector<16x8xf32>
    %cst_99 = arith.constant dense<0xFF800000> : vector<16xf32>
    %221 = vector.multi_reduction <maximumf>, %215, %cst_99 [1] : vector<16x8xf32> to vector<16xf32>
    %222 = vector.shape_cast %221 : vector<16xf32> to vector<16x1xf32>
    %223 = vector.broadcast %222 : vector<16x1xf32> to vector<16x8xf32>
    %224 = arith.subf %215, %223 : vector<16x8xf32>
    %225 = math.exp %224 : vector<16x8xf32>
    %cst_100 = arith.constant dense<0.000000e+00> : vector<16xf32>
    %226 = vector.multi_reduction <add>, %225, %cst_100 [1] : vector<16x8xf32> to vector<16xf32>
    %227 = vector.shape_cast %226 : vector<16xf32> to vector<16x1xf32>
    %228 = tpu.reciprocal %227 : vector<16x1xf32> -> vector<16x1xf32>
    %229 = vector.broadcast %228 : vector<16x1xf32> to vector<16x8xf32>
    %230 = arith.mulf %225, %229 : vector<16x8xf32>
    %231 = vector.shape_cast %230 : vector<16x8xf32> to vector<2x8x8xf32>
    %cst_101 = arith.constant dense<0xFF800000> : vector<16xf32>
    %232 = vector.multi_reduction <maximumf>, %220, %cst_101 [1] : vector<16x8xf32> to vector<16xf32>
    %233 = vector.shape_cast %232 : vector<16xf32> to vector<16x1xf32>
    %234 = vector.broadcast %233 : vector<16x1xf32> to vector<16x8xf32>
    %235 = arith.subf %220, %234 : vector<16x8xf32>
    %236 = math.exp %235 : vector<16x8xf32>
    %cst_102 = arith.constant dense<0.000000e+00> : vector<16xf32>
    %237 = vector.multi_reduction <add>, %236, %cst_102 [1] : vector<16x8xf32> to vector<16xf32>
    %238 = vector.shape_cast %237 : vector<16xf32> to vector<16x1xf32>
    %239 = tpu.reciprocal %238 : vector<16x1xf32> -> vector<16x1xf32>
    %240 = vector.broadcast %239 : vector<16x1xf32> to vector<16x8xf32>
    %241 = arith.mulf %236, %240 : vector<16x8xf32>
    %242 = vector.shape_cast %241 : vector<16x8xf32> to vector<2x8x8xf32>
    %c3 = arith.constant 3 : index
    %c0_103 = arith.constant 0 : index
    %243 = memref.load %arg1[%c3, %c0_103] : memref<4x3xf32, #tpu.memory_space<smem>>
    %c3_104 = arith.constant 3 : index
    %c1_105 = arith.constant 1 : index
    %244 = memref.load %arg1[%c3_104, %c1_105] : memref<4x3xf32, #tpu.memory_space<smem>>
    %c3_106 = arith.constant 3 : index
    %c2_107 = arith.constant 2 : index
    %245 = memref.load %arg1[%c3_106, %c2_107] : memref<4x3xf32, #tpu.memory_space<smem>>
    %246 = vector.broadcast %243 : f32 to vector<2x8x8xf32>
    %247 = arith.mulf %210, %246 : vector<2x8x8xf32>
    %248 = vector.broadcast %244 : f32 to vector<2x8x8xf32>
    %249 = arith.mulf %231, %248 : vector<2x8x8xf32>
    %250 = arith.addf %247, %249 : vector<2x8x8xf32>
    %251 = vector.broadcast %245 : f32 to vector<2x8x8xf32>
    %252 = arith.mulf %242, %251 : vector<2x8x8xf32>
    %253 = arith.addf %250, %252 : vector<2x8x8xf32>
    %cst_108 = arith.constant dense<0.000000e+00> : vector<2x8x8xf32>
    %254 = tpu.matmul %253, %197, %cst_108 {dimension_numbers = #tpu.dot_dimension_numbers<[2], [1], [1], [2], [0, 0, 0, 1, 1, 2], [0], [0]>} : vector<2x8x8xf32>, vector<2x8x8xf32>, vector<2x8x8xf32> -> vector<2x8x8xf32>
    %255 = tpu.concatenate %77, %136, %195, %254 in 2 : vector<2x8x8xf32>, vector<2x8x8xf32>, vector<2x8x8xf32>, vector<2x8x8xf32> -> vector<2x8x32xf32>
    %c0_109 = arith.constant 0 : index
    %c0_110 = arith.constant 0 : index
    %c0_111 = arith.constant 0 : index
    %256 = vector.load %arg13[%c0_109, %c0_110, %c0_111] : memref<2x8x32xf32, #tpu.memory_space<vmem>>, vector<2x8x32xf32>
    tpu.vector_store %arg13[%c0_109, %c0_110, %c0_111], %255 {strides = array<i32>} : memref<2x8x32xf32, #tpu.memory_space<vmem>>, vector<2x8x32xf32>,
    return
  }
  func.func @transform_0(%arg0: i32) -> (i32, i32) {
    %c0_i32 = arith.constant 0 : i32
    %c0_i32_0 = arith.constant 0 : i32
    %c0_i32_1 = arith.constant 0 : i32
    return %c0_i32, %c0_i32_0 : i32, i32
  }
  func.func @transform_1(%arg0: i32) -> (i32, i32, i32) {
    %c0_i32 = arith.constant 0 : i32
    %c0_i32_0 = arith.constant 0 : i32
    %c0_i32_1 = arith.constant 0 : i32
    return %arg0, %c0_i32, %c0_i32_0 : i32, i32, i32
  }
  func.func @transform_2(%arg0: i32) -> (i32, i32, i32) {
    %c0_i32 = arith.constant 0 : i32
    %c0_i32_0 = arith.constant 0 : i32
    %c0_i32_1 = arith.constant 0 : i32
    return %arg0, %c0_i32, %c0_i32_0 : i32, i32, i32
  }
  func.func @transform_3(%arg0: i32) -> (i32, i32, i32) {
    %c0_i32 = arith.constant 0 : i32
    %c0_i32_0 = arith.constant 0 : i32
    %c0_i32_1 = arith.constant 0 : i32
    return %arg0, %c0_i32, %c0_i32_0 : i32, i32, i32
  }
  func.func @transform_4(%arg0: i32) -> (i32, i32) {
    %c0_i32 = arith.constant 0 : i32
    %c0_i32_0 = arith.constant 0 : i32
    %c0_i32_1 = arith.constant 0 : i32
    return %c0_i32, %c0_i32_0 : i32, i32
  }
  func.func @transform_5(%arg0: i32) -> (i32, i32) {
    %c0_i32 = arith.constant 0 : i32
    %c0_i32_0 = arith.constant 0 : i32
    %c0_i32_1 = arith.constant 0 : i32
    return %c0_i32, %c0_i32_0 : i32, i32
  }
  func.func @transform_6(%arg0: i32) -> (i32, i32) {
    %c0_i32 = arith.constant 0 : i32
    %c0_i32_0 = arith.constant 0 : i32
    %c0_i32_1 = arith.constant 0 : i32
    return %c0_i32, %c0_i32_0 : i32, i32
  }
  func.func @transform_7(%arg0: i32) -> (i32, i32) {
    %c0_i32 = arith.constant 0 : i32
    %c0_i32_0 = arith.constant 0 : i32
    %c0_i32_1 = arith.constant 0 : i32
    return %c0_i32, %c0_i32_0 : i32, i32
  }
  func.func @transform_8(%arg0: i32) -> (i32, i32) {
    %c0_i32 = arith.constant 0 : i32
    %c0_i32_0 = arith.constant 0 : i32
    %c0_i32_1 = arith.constant 0 : i32
    return %c0_i32, %c0_i32_0 : i32, i32
  }
  func.func @transform_9(%arg0: i32) -> (i32, i32) {
    %c0_i32 = arith.constant 0 : i32
    %c0_i32_0 = arith.constant 0 : i32
    %c0_i32_1 = arith.constant 0 : i32
    return %c0_i32, %c0_i32_0 : i32, i32
  }
  func.func @transform_10(%arg0: i32) -> (i32, i32) {
    %c0_i32 = arith.constant 0 : i32
    %c0_i32_0 = arith.constant 0 : i32
    %c0_i32_1 = arith.constant 0 : i32
    return %c0_i32, %c0_i32_0 : i32, i32
  }
  func.func @transform_11(%arg0: i32) -> (i32, i32) {
    %c0_i32 = arith.constant 0 : i32
    %c0_i32_0 = arith.constant 0 : i32
    %c0_i32_1 = arith.constant 0 : i32
    return %c0_i32, %c0_i32_0 : i32, i32
  }
  func.func @transform_12(%arg0: i32) -> (i32, i32, i32) {
    %c0_i32 = arith.constant 0 : i32
    %c0_i32_0 = arith.constant 0 : i32
    %c0_i32_1 = arith.constant 0 : i32
    return %arg0, %c0_i32, %c0_i32_0 : i32, i32, i32
  }
}

</mosaic_0001>

<bundles_post_ra>
// kernel: tpu_custom_call.1
= control target key start
LH: loop header
LB: loop body
LE: loop exit
PB: predicated region body
PF: predicated region fallthrough
CT: control target
= control target key end

     0   :  { %17 = vsyncpa [#allocation5], 0  ;;  %s3608_s0 = inlined_call_operand.hbm [shape: f32[4,3], index: 0, kind: input, shape index: {}]   ;;  %s3609_s1 = inlined_call_operand.hbm [shape: f32[2,8,32], index: 1, kind: input, shape index: {}]   ;;  %s3610_s2 = inlined_call_operand.hbm [shape: f32[2,8,8], index: 2, kind: input, shape index: {}]   ;;  %s3611_s3 = inlined_call_operand.hbm [shape: f32[2,8,8], index: 3, kind: input, shape index: {}]   ;;  %s3612_s4 = inlined_call_operand.hbm [shape: f32[32,32], index: 4, kind: input, shape index: {}]   ;;  %s3613_s5 = inlined_call_operand.vmem [shape: f32[1,32], index: 5, kind: input, shape index: {}]   ;;  %s3614_s6 = inlined_call_operand.hbm [shape: f32[32,32], index: 6, kind: input, shape index: {}]   ;;  %s3615_s7 = inlined_call_operand.vmem [shape: f32[1,32], index: 7, kind: input, shape index: {}]   ;;  %s3616_s8 = inlined_call_operand.vmem [shape: f32[8,32], index: 8, kind: input, shape index: {}]   ;;  %s3617_s9 = inlined_call_operand.vmem [shape: f32[1,32], index: 9, kind: input, shape index: {}]   ;;  %s3618_s10 = inlined_call_operand.vmem [shape: f32[8,32], index: 10, kind: input, shape index: {}]   ;;  %s3619_s11 = inlined_call_operand.vmem [shape: f32[1,32], index: 11, kind: input, shape index: {}]   ;;  %s3620_s12 = inlined_call_operand.hbm [shape: f32[2,8,32], index: 12, kind: output, shape index: {}]  }
   0x1   :  { %18 = vsyncpa [#allocation3], 0 }
   0x2   :  { %19 = vsyncpa [#allocation8], 0 }
   0x3   :  { %20 = vsyncpa [#allocation11], 0 }
   0x4   :  { %21 = vsyncpa [#allocation4], 0  ;;  %s3122_s21 = smov [#allocation7]   ;;  %s3123_s23 = smov [#allocation10]  }
   0x5   :  { %s47_s22 = sshll.u32 %s3122_s21, 4  ;;  %s71_s24 = sshll.u32 %s3123_s23, 4  ;;  %s48_s22 = int_to_ptr.vmem [resolvable:$true] %s47_s22  ;;  %s3203_s24 = int_to_ptr.vmem [resolvable:$true] %s71_s24 }
   0x6   :  { %s2970_s27 = scalar_lea.hbm %s3610_s2, 256 }
   0x7   :  { %p2971_p0 = scmp.ne.s32.totalorder %s3610_s2, %s2970_s27  ;;  %p2974_p1 = scmp.lt.u32.totalorder %s2970_s27, %s3610_s2 }
   0x9   :  { %p2976_p2 = pnand %p2974_p1, %p2971_p0 }
   0xb   :  { %2979 = shalt.err (!%p2976_p2)
}
   0xc   :  { %s2980_s14 = scalar_lea.vmem %s48_s22, 256  ;;  %p2985_p4 = scmp.lt.s32.totalorder %s48_s22, %s48_s22 }
   0xd   :  { %p2981_p3 = scmp.ne.s32.totalorder %s48_s22, %s2980_s14  ;;  %p2986_p5 = scmp.lt.s32.totalorder %s2980_s14, %s2980_s14 }
   0xf   :  { %p2987_p6 = por %p2986_p5, %p2985_p4 }
  0x11   :  { %p2988_p7 = pnand %p2987_p6, %p2981_p3 }
  0x13   :  { %2991 = shalt.err (!%p2988_p7)
}
  0x14   :  { %s3124_s15 = smov 128   ;;  %s3125_s16 = smov 8  }
  0x15   :  { %53 = dma.hbm_to_vmem [thread:$0]  %s3610_s2, 256, %s48_s22, [#allocation8], %s3124_s15, %s3124_s15, %s3125_s16  }
  0x16   :  { %s2992_s21 = scalar_lea.hbm %s3612_s4, 512 }
  0x17   :  { %p2993_p8 = scmp.ne.s32.totalorder %s3612_s4, %s2992_s21  ;;  %p2996_p9 = scmp.lt.u32.totalorder %s2992_s21, %s3612_s4 }
  0x19   :  { %p2998_p10 = pnand %p2996_p9, %p2993_p8 }
  0x1b   :  { %3001 = shalt.err (!%p2998_p10)
}
  0x1c   :  { %s3002_s28 = scalar_lea.vmem %s3203_s24, 512  ;;  %p3007_p12 = scmp.lt.s32.totalorder %s3203_s24, %s3203_s24 }
  0x1d   :  { %p3003_p11 = scmp.ne.s32.totalorder %s3203_s24, %s3002_s28  ;;  %p3008_p13 = scmp.lt.s32.totalorder %s3002_s28, %s3002_s28 }
  0x1f   :  { %p3009_p0 = por %p3008_p13, %p3007_p12 }
  0x21   :  { %p3010_p1 = pnand %p3009_p0, %p3003_p11 }
  0x23   :  { %3013 = shalt.err (!%p3010_p1)
}
  0x24   :  { %77 = dma.hbm_to_vmem [thread:$0]  %s3612_s4, 512, %s3203_s24, [#allocation11], %s3124_s15, %s3124_s15, %s3125_s16  }
  0x25   :  { %s3014_s13 = scalar_lea.hbm %s3608_s0, 64 }
  0x26   :  { %p3015_p2 = scmp.ne.s32.totalorder %s3608_s0, %s3014_s13  ;;  %p3018_p3 = scmp.lt.u32.totalorder %s3014_s13, %s3608_s0 }
  0x28   :  { %p3020_p4 = pnand %p3018_p3, %p3015_p2 }
  0x2a   :  { %3023 = shalt.err (!%p3020_p4)
}
  0x2b   :  { %s3126_s20 = smov [#allocation2]   ;;  %s3127_s4 = smov [#allocation6]  }
  0x2c   :  { %29 = dma.hbm_to_smem %s3608_s0, 64, %s3126_s20, [#allocation5]  }
  0x2d   :  { %s35_s24 = sshll.u32 %s3127_s4, 4  ;;  %s3128_s25 = smov [#allocation9]   ;;  %s36_s24 = int_to_ptr.vmem [resolvable:$true] %s35_s24 }
  0x2e   :  { %s59_s26 = sshll.u32 %s3128_s25, 4  ;;  %s3024_s2 = scalar_lea.hbm %s3609_s1, 256  ;;  %s60_s26 = int_to_ptr.vmem [resolvable:$true] %s59_s26 }
  0x2f   :  { %p3025_p5 = scmp.ne.s32.totalorder %s3609_s1, %s3024_s2  ;;  %p3028_p6 = scmp.lt.u32.totalorder %s3024_s2, %s3609_s1 }
  0x31   :  { %p3030_p7 = pnand %p3028_p6, %p3025_p5 }
  0x33   :  { %3033 = shalt.err (!%p3030_p7)
}
  0x34   :  { %s3034_s0 = scalar_lea.vmem %s36_s24, 256  ;;  %p3039_p9 = scmp.lt.s32.totalorder %s36_s24, %s36_s24 }
  0x35   :  { %p3035_p8 = scmp.ne.s32.totalorder %s36_s24, %s3034_s0  ;;  %p3040_p10 = scmp.lt.s32.totalorder %s3034_s0, %s3034_s0 }
  0x37   :  { %p3041_p11 = por %p3040_p10, %p3039_p9 }
  0x39   :  { %p3042_p12 = pnand %p3041_p11, %p3035_p8 }
  0x3b   :  { %3045 = shalt.err (!%p3042_p12)
}
  0x3c   :  { %41 = dma.hbm_to_vmem [thread:$0]  %s3609_s1, 256, %s36_s24, [#allocation3], %s3124_s15, %s3124_s15, %s3125_s16  }
  0x3d   :  { %s3046_s20 = scalar_lea.hbm %s3611_s3, 256 }
  0x3e   :  { %p3047_p13 = scmp.ne.s32.totalorder %s3611_s3, %s3046_s20  ;;  %p3050_p0 = scmp.lt.u32.totalorder %s3046_s20, %s3611_s3 }
  0x40   :  { %p3052_p1 = pnand %p3050_p0, %p3047_p13 }
  0x42   :  { %3055 = shalt.err (!%p3052_p1)
}
  0x43   :  { %s3056_s27 = scalar_lea.vmem %s60_s26, 256  ;;  %p3061_p3 = scmp.lt.s32.totalorder %s60_s26, %s60_s26 }
  0x44   :  { %p3057_p2 = scmp.ne.s32.totalorder %s60_s26, %s3056_s27  ;;  %p3062_p4 = scmp.lt.s32.totalorder %s3056_s27, %s3056_s27 }
  0x46   :  { %p3063_p5 = por %p3062_p4, %p3061_p3 }
  0x48   :  { %p3064_p6 = pnand %p3063_p5, %p3057_p2 }
  0x4a   :  { %3067 = shalt.err (!%p3064_p6)
}
  0x4b   :  { %65 = dma.hbm_to_vmem [thread:$0]  %s3611_s3, 256, %s60_s26, [#allocation8], %s3124_s15, %s3124_s15, %s3125_s16  }
  0x4c   :  { %s3129_s28 = smov [#allocation12]   ;;  %s3068_s30 = scalar_lea.hbm %s3614_s6, 512 }
  0x4d   :  { %s85_s2 = sshll.u32 %s3129_s28, 4  ;;  %p3069_p7 = scmp.ne.s32.totalorder %s3614_s6, %s3068_s30  ;;  %s86_s2 = int_to_ptr.vmem [resolvable:$true] %s85_s2 }
  0x4e   :  { %p3072_p8 = scmp.lt.u32.totalorder %s3068_s30, %s3614_s6 }
  0x50   :  { %p3074_p9 = pnand %p3072_p8, %p3069_p7 }
  0x52   :  { %3077 = shalt.err (!%p3074_p9)
}
  0x53   :  { %s3078_s18 = scalar_lea.vmem %s86_s2, 512  ;;  %p3083_p11 = scmp.lt.s32.totalorder %s86_s2, %s86_s2 }
  0x54   :  { %p3079_p10 = scmp.ne.s32.totalorder %s86_s2, %s3078_s18  ;;  %p3084_p12 = scmp.lt.s32.totalorder %s3078_s18, %s3078_s18 }
  0x56   :  { %p3085_p13 = por %p3084_p12, %p3083_p11 }
  0x58   :  { %p3086_p0 = pnand %p3085_p13, %p3079_p10 }
  0x5a   :  { %3089 = shalt.err (!%p3086_p0)
}
  0x5b   :  { %91 = dma.hbm_to_vmem [thread:$0]  %s3614_s6, 512, %s86_s2, [#allocation11], %s3124_s15, %s3124_s15, %s3125_s16  }
  0x5c   :  { %3112 = dma.done.wait [#allocation5], 64  }
  0x5d   :  { %3113 = vsyncadd [#allocation5], 4294967232 }
  0x5e   :  { %3114 = dma.done.wait [#allocation3], 256  }
  0x5f   :  { %3115 = vsyncadd [#allocation3], 4294967040 }
  0x60   :  { %3116 = dma.done.wait [#allocation8], 512  }
  0x61   :  { %3117 = vsyncadd [#allocation8], 4294966784 }
  0x62   :  { %3118 = dma.done.wait [#allocation11], 1024  }
  0x63   :  { %3119 = vsyncadd [#allocation11], 4294966272 }
  0x64   :  { %120 = sfence }
  0x65   :  { %v220_v0 = vld [vmem:[#allocation12] sm:$0xff]  ;;  %v221_v1 = vld [vmem:[#allocation12 + $0x8] sm:$0xff]  ;;  %vm138_vm0 = vcmask 261120   ;;  %v222_v5 = vld [vmem:[#allocation12 + $0x10] sm:$0xff]  ;;  %v3130_v14 = vmov 0.0   ;;  %vm3131_vm1 = vmmov 0  }
  0x66   :  { %v127_v2 = vld [vmem:[#allocation10] sm:$0xff]  ;;  %v2850_v3 = vpack.c.bf16 %v221_v1, %v220_v0  ;;  %v128_v4 = vld [vmem:[#allocation10 + $0x8] sm:$0xff]  ;;  %v223_v6 = vld [vmem:[#allocation12 + $0x18] sm:$0xff]  ;;  %vm306_vm2 = vcmask 64512   ;;  %s3408_s1 = sld [smem:[#allocation2]]  ;;  %s3410_s24 = sld [smem:[#allocation2 + $0x2]] }
  0x67   :  { %v2842_v7 = vpack.c.bf16 %v128_v4, %v127_v2  ;;  %v2854_v8 = vpack.c.bf16 %v223_v6, %v222_v5  ;;  %v129_v9 = vld [vmem:[#allocation10 + $0x10] sm:$0xff]  ;;  %v130_v10 = vld [vmem:[#allocation10 + $0x18] sm:$0xff]  ;;  %v2576_v15 = vld [vmem:[%s3615_s7] ss:$0 sm:$0xff]  ;;  %s3133_s28 = smov 112   ;;  %s3469_s2 = sld [smem:[#allocation2 + $0x81]] }
  0x68   :  { %v121_v11 = vld [vmem:[#allocation6] sm:$0xff]  ;;  %2851 = vmatprep.subr.bf16.mxu1 %v2850_v3  ;;  %v2846_v12 = vpack.c.bf16 %v130_v10, %v129_v9  ;;  %v122_v13 = vld [vmem:[#allocation6 + $0x8] sm:$0xff]  ;;  %v2573_v16 = vld [vmem:[%s3613_s5] ss:$0 sm:$0xff]  ;;  %s3471_s22 = sld [smem:[#allocation2 + $0x80]]  ;;  %s3473_s29 = sld [smem:[#allocation2 + $0x82]] }
  0x69   :  { %2719 = vmatprep.mubr.msk.f32.mxu1 %vm138_vm0, %v121_v11  ;;  %2853 = vmatpush3.bf16.msra.mxu1 %v2850_v3  ;;  %v3318_v21 = vld [vmem:[%s3618_s10] sm:$0xff]  ;;  %v3337_v27 = vld [vmem:[#allocation9] sm:$0xff]  ;;  %v3346_v29 = vld [vmem:[#allocation9 + $0x8] sm:$0xff]  ;;  %s3134_s30 = smov 104   ;;  %s3532_s13 = sld [smem:[#allocation2 + $0x101]]  ;;  %vm2548_vm3 = vcmask 195584  }
  0x6a   :  { %2843 = vmatprep.subr.bf16.mxu0 %v2842_v7  ;;  %2855 = vmatprep.subr.bf16.mxu1 %v2854_v8  ;;  %v3327_v25 = vld [vmem:[%s3616_s8] sm:$0xff]  ;;  %v3351_v30 = vld [vmem:[#allocation7 + $0x8] sm:$0xff]  ;;  %s3534_s0 = sld [smem:[#allocation2 + $0x100]]  ;;  %s3536_s14 = sld [smem:[#allocation2 + $0x102]]  ;;  %vm2545_vm4 = vcmask 130048  }
  0x6b   :  { %2845 = vmatpush3.bf16.msra.mxu0 %v2842_v7  ;;  %2708 = vmatprep.mubr.msk.f32.mxu0 %vm138_vm0, %v121_v11  ;;  %v3341_v28 = vld [vmem:[#allocation7] sm:$0xff]  ;;  %s3135_s17 = smov 16   ;;  %s2628_s18 = sld [smem:[#allocation2 + $0x181]] }
  0x6c   :  { %2847 = vmatprep.subr.bf16.mxu0 %v2846_v12  ;;  %v3373_v38 = vld [vmem:[%s3617_s9] ss:$0 sm:$0xff]  ;;  %s3132_s9 = smov 120   ;;  %s2627_s3 = sld [smem:[#allocation2 + $0x180]] }
  0x6d   :  { %2857 = vmatpush3.bf16.msra.mxu1 %v2854_v8  ;;  %v3378_v39 = vld [vmem:[%s3619_s11] ss:$0 sm:$0xff]  ;;  %s3406_s11 = sld [smem:[#allocation2 + $0x1]]  ;;  %s2629_s26 = sld [smem:[#allocation2 + $0x182]] }
  0x6e   :  { %2727 = vmatprep.subr.mxu1 %v3130_v14  ;;  %s3136_s6 = smov 24   ;;  %s3137_s19 = smov [#allocation13]  }
  0x6f   :  { %2849 = vmatpush3.bf16.msra.mxu0 %v2846_v12  ;;  %s2558_s20 = sshll.u32 %s3137_s19, 4  ;;  %s2559_s20 = int_to_ptr.vmem [resolvable:$true] %s2558_s20 }
  0x70   :  { %2720 = vmatmul.mubr.msk.f32.vlgmr.msra.gmra.mrb[0].mxu1 %vm138_vm0, %v122_v13  ;;  %2722 = vmatprep.subr.mxu0 %v3130_v14  ;;  %s3090_s21 = scalar_lea.vmem %s2559_s20, 256  ;;  %p3095_p2 = scmp.lt.s32.totalorder %s2559_s20, %s2559_s20 }
  0x71   :  { %2729 = vmatprep.mubr.msk.f32.mxu1 %vm3131_vm1, %v3130_v14  ;;  %p3091_p1 = scmp.ne.s32.totalorder %s2559_s20, %s3090_s21  ;;  %p3096_p3 = scmp.lt.s32.totalorder %s3090_s21, %s3090_s21 }
  0x72   :  { %2709 = vmatmul.mubr.msk.f32.vlgmr.msra.gmra.mrb[0].mxu0 %vm138_vm0, %v122_v13 }
  0x73   :  { %2724 = vmatprep.mubr.msk.f32.mxu0 %vm3131_vm1, %v3130_v14  ;;  %p3097_p4 = por %p3096_p3, %p3095_p2 }
  0x75   :  { %p3098_p5 = pnand %p3097_p4, %p3091_p1 }
 0x143   :  { %v2721_v17 = vpop.f32.mrb[0].mxu1 }
 0x144   :  { %v3313_v18 = vadd.f32 %v2721_v17, %v2576_v15  ;;  %v297_v19 = vpop.f32.mrb[1].mxu1 }
 0x145   :  { %v2710_v20 = vpop.f32.mrb[0].mxu0  ;;  %v3320_v22 = vadd.f32 %v2576_v15, %v297_v19 }
 0x146   :  { %v3322_v23 = vadd.f32 %v2710_v20, %v2573_v16  ;;  %v211_v24 = vpop.f32.mrb[1].mxu0  ;;  %2728 = vmatpush3.xpose.msk.msra.mxu1 %vm306_vm2, %v3313_v18 }
 0x147   :  { %v3331_v26 = vadd.f32 %v2573_v16, %v211_v24  ;;  %2723 = vmatpush3.xpose.msk.msra.mxu0 %vm306_vm2, %v3320_v22  ;;  %2737 = vmatprep.subr.mxu1 %v3318_v21 }
 0x148   :  { %2732 = vmatprep.subr.mxu0 %v3327_v25 }
 0x149   :  { %2730 = vmatmul.mubr.msk.f32.vlgmr.msra.gmra.mrb[2].mxu1 %vm306_vm2, %v3322_v23 }
 0x14a   :  { %2725 = vmatmul.mubr.msk.f32.vlgmr.msra.gmra.mrb[2].mxu0 %vm306_vm2, %v3331_v26  ;;  %2738 = vmatpush3.msra.mxu1 %v3318_v21 }
 0x14b   :  { %2733 = vmatpush3.msra.mxu0 %v3327_v25  ;;  %2739 = vmatprep.mubr.msk.f32.mxu1 %vm306_vm2, %v3337_v27 }
 0x14c   :  { %2747 = vmatprep.subr.mxu1 %v3130_v14  ;;  %2734 = vmatprep.mubr.msk.f32.mxu0 %vm306_vm2, %v3341_v28 }
 0x14d   :  { %2740 = vmatmul.mubr.msk.f32.vlgmr.msra.gmra.mrb[4].mxu1 %vm306_vm2, %v3346_v29  ;;  %2742 = vmatprep.subr.mxu0 %v3130_v14 }
 0x14e   :  { %2748 = vmatpush3.msra.mxu1 %v3313_v18  ;;  %2735 = vmatmul.mubr.msk.f32.vlgmr.msra.gmra.mrb[4].mxu0 %vm306_vm2, %v3351_v30 }
 0x14f   :  { %2743 = vmatpush3.msra.mxu0 %v3320_v22  ;;  %2749 = vmatprep.mubr.msk.f32.mxu1 %vm3131_vm1, %v3130_v14 }
 0x150   :  { %2757 = vmatprep.subr.mxu1 %v3130_v14  ;;  %2744 = vmatprep.mubr.msk.f32.mxu0 %vm3131_vm1, %v3130_v14 }
 0x151   :  { %2752 = vmatprep.subr.mxu0 %v3130_v14 }
 0x21c   :  { %v455_v31 = vpop.f32.mrb[2].mxu1 }
 0x21d   :  { %v460_v32 = vmul.f32 0.17677669, %v455_v31  ;;  %v379_v33 = vpop.f32.mrb[2].mxu0  ;;  %v2731_v34 = vpop.f32.mrb[3].mxu1 }
 0x21e   :  { %v459_v35 = vmul.f32 0.17677669, %v379_v33  ;;  %v2726_v36 = vpop.f32.mrb[3].mxu0 }
 0x21f   :  { %v464_v37 = vsel %vm306_vm2, %v460_v32, -inf }
 0x220   :  { %465 = vmax.xlane.f32.xlu1 %v464_v37  ;;  %v461_v40 = vsel %vm306_vm2, %v459_v35, -inf  ;;  %v2741_v41 = vpop.f32.mrb[4].mxu1 }
 0x221   :  { %462 = vmax.xlane.f32.xlu0 %v461_v40  ;;  %v2736_v42 = vpop.f32.mrb[4].mxu0  ;;  %v652_v43 = vpop.f32.mrb[5].mxu1  ;;  %v658_v46 = vadd.f32 %v2741_v41, %v3378_v39  ;;  %v708_v40 = vstv %s3408_s1 }
 0x222   :  { %v569_v44 = vadd.f32 %v2736_v42, %v3373_v38  ;;  %v563_v45 = vpop.f32.mrb[5].mxu0  ;;  %v653_v48 = vadd.f32 %v3378_v39, %v652_v43  ;;  %v716_v43 = vstv %s3410_s24 }
 0x223   :  { %v564_v47 = vadd.f32 %v3373_v38, %v563_v45  ;;  %v686_v51 = vsel %vm306_vm2, %v658_v46, -inf }
 0x224   :  { %v664_v49 = vsel %vm306_vm2, %v569_v44, -inf  ;;  %v683_v52 = vsel %vm306_vm2, %v653_v48, -inf }
 0x225   :  { %665 = vmax.xlane.f32.xlu1 %v664_v49  ;;  %v661_v50 = vsel %vm306_vm2, %v564_v47, -inf }
 0x226   :  { %662 = vmax.xlane.f32.xlu0 %v661_v50 }
 0x229   :  { %687 = vmax.xlane.f32.xlu1 %v686_v51 }
 0x22a   :  { %684 = vmax.xlane.f32.xlu0 %v683_v52 }
 0x2ad   :  { %v466_v53 = vpop.xlane.xlu1 %465 }
 0x2ae   :  { %v468_v54 = vsub.f32 %v460_v32, %v466_v53  ;;  %v463_v55 = vpop.xlane.xlu0 %462 }
 0x2af   :  { %v467_v56 = vsub.f32 %v459_v35, %v463_v55  ;;  %v711_v35 = vstv %s3406_s11 }
 0x2b0   :  { %v471_v57 = vmul.f32 1.442695, %v468_v54 }
 0x2b1   :  { %v469_v58 = vmul.f32 1.442695, %v467_v56 }
 0x2b2   :  { %2874 = vpow2.f32 %v471_v57  ;;  %v666_v59 = vpop.xlane.xlu1 %665 }
 0x2b3   :  { %v668_v60 = vsub.f32 %v569_v44, %v666_v59  ;;  %v663_v61 = vpop.xlane.xlu0 %662  ;;  %2876 = vpow2.f32 %v469_v58 }
 0x2b4   :  { %v667_v16 = vsub.f32 %v564_v47, %v663_v61 }
 0x2b5   :  { %v671_v62 = vmul.f32 1.442695, %v668_v60 }
 0x2b6   :  { %v688_v63 = vpop.xlane.xlu1 %687  ;;  %v669_v17 = vmul.f32 1.442695, %v667_v16 }
 0x2b7   :  { %2878 = vpow2.f32 %v671_v62  ;;  %v690_v0 = vsub.f32 %v658_v46, %v688_v63  ;;  %v685_v1 = vpop.xlane.xlu0 %684 }
 0x2b8   :  { %v689_v2 = vsub.f32 %v653_v48, %v685_v1 }
 0x2b9   :  { %v693_v3 = vmul.f32 1.442695, %v690_v0 }
 0x2ba   :  { %v691_v4 = vmul.f32 1.442695, %v689_v2 }
 0x2bb   :  { %2880 = vpow2.f32 %v693_v3 }
 0x2bc   :  { %v2875_v5 = vpop.eup %2874  ;;  %2882 = vpow2.f32 %v691_v4 }
 0x2bd   :  { %v476_v6 = vsel %vm306_vm2, %v2875_v5, 0.0  ;;  %v3390_v7 = vpop.eup %2876  ;;  %2884 = vpow2.f32 %v669_v17 }
 0x2be   :  { %477 = vadd.xlane.f32.xlu0 %v476_v6  ;;  %v473_v9 = vsel %vm306_vm2, %v3390_v7, 0.0 }
 0x2c1   :  { %v2879_v8 = vpop.eup %2878 }
 0x2c2   :  { %474 = vadd.xlane.f32.xlu0 %v473_v9  ;;  %v676_v10 = vsel %vm306_vm2, %v2879_v8, 0.0 }
 0x2c3   :  { %677 = vadd.xlane.f32.xlu1 %v676_v10 }
 0x2c5   :  { %v2881_v11 = vpop.eup %2880 }
 0x2c6   :  { %v2883_v12 = vpop.eup %2882  ;;  %v698_v13 = vsel %vm306_vm2, %v2881_v11, 0.0 }
 0x2c7   :  { %699 = vadd.xlane.f32.xlu1 %v698_v13  ;;  %v695_v15 = vsel %vm306_vm2, %v2883_v12, 0.0  ;;  %v2885_v19 = vpop.eup %2884 }
 0x2c8   :  { %696 = vadd.xlane.f32.xlu0 %v695_v15  ;;  %v673_v20 = vsel %vm306_vm2, %v2885_v19, 0.0 }
 0x2d8   :  { %947 = vrot.lane.b32.xlu1 %v3313_v18, %s3132_s9 }
 0x2de   :  { %869 = vrot.lane.b32.xlu0 %v3320_v22, %s3132_s9 }
 0x2e2   :  { %1048 = vrot.lane.b32.xlu0 %v3327_v25, %s3132_s9 }
 0x2e6   :  { %1051 = vrot.lane.b32.xlu0 %v3373_v38, %s3132_s9 }
 0x2fc   :  { %674 = vadd.xlane.f32.xlu1 %v673_v20 }
 0x30d   :  { %867 = vrot.lane.b32.xlu1 %v3331_v26, %s3132_s9 }
 0x311   :  { %945 = vrot.lane.b32.xlu1 %v3322_v23, %s3132_s9 }
 0x315   :  { %1130 = vrot.lane.b32.xlu1 %v3318_v21, %s3132_s9 }
 0x319   :  { %1133 = vrot.lane.b32.xlu1 %v3378_v39, %s3132_s9 }
 0x34b   :  { %v478_v24 = vpop.xlane.xlu0 %477 }
 0x34c   :  { %2886 = vrcp.f32 %v478_v24 }
 0x34f   :  { %v475_v50 = vpop.xlane.xlu0 %474 }
 0x350   :  { %v678_v31 = vpop.xlane.xlu1 %677 }
 0x351   :  { %2888 = vrcp.f32 %v678_v31 }
 0x354   :  { %v700_v32 = vpop.xlane.xlu1 %699 }
 0x355   :  { %2890 = vrcp.f32 %v700_v32  ;;  %v697_v51 = vpop.xlane.xlu0 %696 }
 0x356   :  { %v2887_v33 = vpop.eup %2886  ;;  %2892 = vrcp.f32 %v475_v50 }
 0x357   :  { %v482_v36 = vmul.f32 %v2887_v33, %v2875_v5  ;;  %2894 = vrcp.f32 %v697_v51 }
 0x358   :  { %v948_v49 = vpop.permute.xlu1 %947 }
 0x359   :  { %v710_v44 = vmul.f32 %v708_v40, %v482_v36  ;;  %v870_v0 = vpop.permute.xlu0 %869 }
 0x35b   :  { %v2889_v34 = vpop.eup %2888 }
 0x35c   :  { %v682_v37 = vmul.f32 %v2889_v34, %v2879_v8 }
 0x35d   :  { %v1049_v4 = vpop.permute.xlu0 %1048 }
 0x35e   :  { %v713_v41 = vmul.f32 %v711_v35, %v682_v37 }
 0x35f   :  { %v2891_v42 = vpop.eup %2890 }
 0x360   :  { %v704_v45 = vmul.f32 %v2891_v42, %v2881_v11  ;;  %v715_v47 = vadd.f32 %v713_v41, %v710_v44  ;;  %v2893_v54 = vpop.eup %2892 }
 0x361   :  { %v2895_v56 = vpop.eup %2894  ;;  %v481_v57 = vmul.f32 %v2893_v54, %v3390_v7  ;;  %v1052_v20 = vpop.permute.xlu0 %1051 }
 0x362   :  { %v718_v46 = vmul.f32 %v716_v43, %v704_v45  ;;  %v703_v59 = vmul.f32 %v2895_v56, %v2883_v12 }
 0x363   :  { %v709_v62 = vmul.f32 %v708_v40, %v481_v57 }
 0x364   :  { %v720_v48 = vadd.f32 %v718_v46, %v715_v47  ;;  %v717_v1 = vmul.f32 %v716_v43, %v703_v59 }
 0x366   :  { %2750 = vmatmul.mubr.msk.f32.vlgmr.msra.gmra.mrb[6].mxu1 %vm306_vm2, %v720_v48 }
 0x367   :  { %2758 = vmatpush3.xpose.msk.msra.mxu1 %vm306_vm2, %v948_v49  ;;  %2759 = vmatprep.mubr.msk.f32.mxu1 %vm3131_vm1, %v3130_v14 }
 0x389   :  { %v675_v52 = vpop.xlane.xlu1 %674 }
 0x38a   :  { %2896 = vrcp.f32 %v675_v52 }
 0x38d   :  { %v868_v53 = vpop.permute.xlu1 %867 }
 0x391   :  { %v946_v55 = vpop.permute.xlu1 %945 }
 0x392   :  { %2760 = vmatmul.mubr.msk.f32.vlgmr.msra.gmra.mrb[8].mxu1 %vm306_vm2, %v946_v55 }
 0x393   :  { %2769 = vmatprep.mubr.msk.f32.mxu1 %vm306_vm2, %v3337_v27 }
 0x394   :  { %v2897_v58 = vpop.eup %2896 }
 0x395   :  { %v681_v60 = vmul.f32 %v2897_v58, %v2885_v19  ;;  %v1131_v61 = vpop.permute.xlu1 %1130 }
 0x396   :  { %2767 = vmatprep.subr.mxu1 %v1131_v61 }
 0x397   :  { %v712_v63 = vmul.f32 %v711_v35, %v681_v60  ;;  %2768 = vmatpush3.msra.mxu1 %v1131_v61 }
 0x398   :  { %2777 = vmatprep.subr.mxu1 %v3130_v14  ;;  %2770 = vmatmul.mubr.msk.f32.vlgmr.msra.gmra.mrb[10].mxu1 %vm306_vm2, %v3346_v29 }
 0x399   :  { %2778 = vmatpush3.msra.mxu1 %v948_v49  ;;  %v714_v2 = vadd.f32 %v712_v63, %v709_v62  ;;  %2779 = vmatprep.mubr.msk.f32.mxu1 %vm3131_vm1, %v3130_v14  ;;  %v1134_v24 = vpop.permute.xlu1 %1133 }
 0x39a   :  { %2787 = vmatprep.subr.mxu1 %v3130_v14 }
 0x39b   :  { %v719_v3 = vadd.f32 %v717_v1, %v714_v2 }
 0x39d   :  { %2745 = vmatmul.mubr.msk.f32.vlgmr.msra.gmra.mrb[6].mxu0 %vm306_vm2, %v719_v3 }
 0x39e   :  { %2753 = vmatpush3.xpose.msk.msra.mxu0 %vm306_vm2, %v870_v0  ;;  %2754 = vmatprep.mubr.msk.f32.mxu0 %vm3131_vm1, %v3130_v14 }
 0x39f   :  { %2762 = vmatprep.subr.mxu0 %v1049_v4 }
 0x3a1   :  { %2755 = vmatmul.mubr.msk.f32.vlgmr.msra.gmra.mrb[8].mxu0 %vm306_vm2, %v868_v53 }
 0x3a2   :  { %2763 = vmatpush3.msra.mxu0 %v1049_v4  ;;  %2764 = vmatprep.mubr.msk.f32.mxu0 %vm306_vm2, %v3341_v28 }
 0x3a3   :  { %2772 = vmatprep.subr.mxu0 %v3130_v14 }
 0x3a5   :  { %2765 = vmatmul.mubr.msk.f32.vlgmr.msra.gmra.mrb[10].mxu0 %vm306_vm2, %v3351_v30 }
 0x3a6   :  { %2773 = vmatpush3.msra.mxu0 %v870_v0  ;;  %2774 = vmatprep.mubr.msk.f32.mxu0 %vm3131_vm1, %v3130_v14 }
 0x3a7   :  { %2782 = vmatprep.subr.mxu0 %v3130_v14 }
 0x439   :  { %v3442_v5 = vpop.f32.mrb[6].mxu1 }
 0x43a   :  { %v2751_v6 = vpop.f32.mrb[7].mxu1 }
 0x465   :  { %v1019_v7 = vpop.f32.mrb[8].mxu1 }
 0x466   :  { %v1024_v8 = vmul.f32 0.17677669, %v1019_v7  ;;  %v2761_v9 = vpop.f32.mrb[9].mxu1 }
 0x468   :  { %v1028_v10 = vsel %vm306_vm2, %v1024_v8, -inf }
 0x469   :  { %1029 = vmax.xlane.f32.xlu0 %v1028_v10 }
 0x46b   :  { %v2771_v11 = vpop.f32.mrb[10].mxu1 }
 0x46c   :  { %v1202_v12 = vpop.f32.mrb[11].mxu1  ;;  %v1208_v37 = vadd.f32 %v2771_v11, %v1134_v24 }
 0x46d   :  { %v1203_v35 = vadd.f32 %v1202_v12, %v1134_v24 }
 0x46e   :  { %v1236_v43 = vsel %vm306_vm2, %v1208_v37, -inf }
 0x46f   :  { %v1233_v42 = vsel %vm306_vm2, %v1203_v35, -inf }
 0x470   :  { %v3445_v13 = vpop.f32.mrb[6].mxu0 }
 0x471   :  { %v2746_v15 = vpop.f32.mrb[7].mxu0 }
 0x474   :  { %v941_v16 = vpop.f32.mrb[8].mxu0 }
 0x475   :  { %v1023_v17 = vmul.f32 0.17677669, %v941_v16  ;;  %v2756_v19 = vpop.f32.mrb[9].mxu0 }
 0x476   :  { %v1261_v19 = vstv %s3469_s2 }
 0x477   :  { %v1025_v31 = vsel %vm306_vm2, %v1023_v17, -inf }
 0x478   :  { %1026 = vmax.xlane.f32.xlu0 %v1025_v31  ;;  %v2766_v32 = vpop.f32.mrb[10].mxu0  ;;  %v1258_v31 = vstv %s3471_s22 }
 0x479   :  { %v1126_v33 = vadd.f32 %v2766_v32, %v1052_v20  ;;  %v1120_v34 = vpop.f32.mrb[11].mxu0 }
 0x47a   :  { %v1121_v36 = vadd.f32 %v1120_v34, %v1052_v20  ;;  %v1266_v34 = vstv %s3473_s29 }
 0x47b   :  { %v1214_v40 = vsel %vm306_vm2, %v1126_v33, -inf }
 0x47c   :  { %1215 = vmax.xlane.f32.xlu0 %v1214_v40  ;;  %v1211_v41 = vsel %vm306_vm2, %v1121_v36, -inf }
 0x47d   :  { %1212 = vmax.xlane.f32.xlu1 %v1211_v41 }
 0x480   :  { %1234 = vmax.xlane.f32.xlu0 %v1233_v42 }
 0x481   :  { %1237 = vmax.xlane.f32.xlu1 %v1236_v43 }
 0x4f6   :  { %v1030_v44 = vpop.xlane.xlu0 %1029 }
 0x4f7   :  { %v1032_v45 = vsub.f32 %v1024_v8, %v1030_v44 }
 0x4f9   :  { %v1035_v46 = vmul.f32 1.442695, %v1032_v45 }
 0x4fb   :  { %2898 = vpow2.f32 %v1035_v46 }
 0x505   :  { %v2899_v47 = vpop.eup %2898  ;;  %v1027_v48 = vpop.xlane.xlu0 %1026 }
 0x506   :  { %v1031_v49 = vsub.f32 %v1023_v17, %v1027_v48  ;;  %v1040_v50 = vsel %vm306_vm2, %v2899_v47, 0.0 }
 0x507   :  { %1041 = vadd.xlane.f32.xlu0 %v1040_v50 }
 0x508   :  { %v1033_v51 = vmul.f32 1.442695, %v1031_v49 }
 0x509   :  { %v1216_v52 = vpop.xlane.xlu0 %1215 }
 0x50a   :  { %2900 = vpow2.f32 %v1033_v51  ;;  %v1218_v53 = vsub.f32 %v1126_v33, %v1216_v52  ;;  %v1213_v54 = vpop.xlane.xlu1 %1212 }
 0x50b   :  { %v1217_v7 = vsub.f32 %v1121_v36, %v1213_v54 }
 0x50c   :  { %v1221_v55 = vmul.f32 1.442695, %v1218_v53 }
 0x50d   :  { %v1235_v56 = vpop.xlane.xlu0 %1234  ;;  %v1219_v8 = vmul.f32 1.442695, %v1217_v7 }
 0x50e   :  { %2902 = vpow2.f32 %v1221_v55  ;;  %v1239_v57 = vsub.f32 %v1203_v35, %v1235_v56  ;;  %v1238_v58 = vpop.xlane.xlu1 %1237 }
 0x50f   :  { %v1240_v59 = vsub.f32 %v1208_v37, %v1238_v58 }
 0x510   :  { %v1241_v60 = vmul.f32 1.442695, %v1239_v57 }
 0x511   :  { %v1243_v61 = vmul.f32 1.442695, %v1240_v59 }
 0x512   :  { %2904 = vpow2.f32 %v1241_v60 }
 0x513   :  { %2906 = vpow2.f32 %v1243_v61 }
 0x514   :  { %v3453_v62 = vpop.eup %2900  ;;  %2908 = vpow2.f32 %v1219_v8 }
 0x515   :  { %v1037_v63 = vsel %vm306_vm2, %v3453_v62, 0.0 }
 0x516   :  { %1038 = vadd.xlane.f32.xlu0 %v1037_v63 }
 0x518   :  { %v2903_v0 = vpop.eup %2902 }
 0x519   :  { %v1226_v1 = vsel %vm306_vm2, %v2903_v0, 0.0 }
 0x51a   :  { %1227 = vadd.xlane.f32.xlu1 %v1226_v1 }
 0x51c   :  { %v2905_v2 = vpop.eup %2904 }
 0x51d   :  { %v2907_v3 = vpop.eup %2906  ;;  %v1245_v4 = vsel %vm306_vm2, %v2905_v2, 0.0 }
 0x51e   :  { %1246 = vadd.xlane.f32.xlu0 %v1245_v4  ;;  %v1248_v6 = vsel %vm306_vm2, %v2907_v3, 0.0  ;;  %v2909_v9 = vpop.eup %2908 }
 0x51f   :  { %1249 = vadd.xlane.f32.xlu1 %v1248_v6  ;;  %v1223_v10 = vsel %vm306_vm2, %v2909_v9, 0.0 }
 0x530   :  { %1499 = vrot.lane.b32.xlu1 %v3313_v18, %s3133_s28 }
 0x534   :  { %1421 = vrot.lane.b32.xlu0 %v3320_v22, %s3133_s28 }
 0x538   :  { %1599 = vrot.lane.b32.xlu0 %v3327_v25, %s3133_s28 }
 0x53c   :  { %1602 = vrot.lane.b32.xlu0 %v3373_v38, %s3133_s28 }
 0x554   :  { %1224 = vadd.xlane.f32.xlu1 %v1223_v10 }
 0x565   :  { %1419 = vrot.lane.b32.xlu1 %v3331_v26, %s3133_s28 }
 0x569   :  { %1497 = vrot.lane.b32.xlu1 %v3322_v23, %s3133_s28 }
 0x56d   :  { %1680 = vrot.lane.b32.xlu1 %v3318_v21, %s3133_s28 }
 0x571   :  { %1683 = vrot.lane.b32.xlu1 %v3378_v39, %s3133_s28 }
 0x594   :  { %v1042_v11 = vpop.xlane.xlu0 %1041 }
 0x595   :  { %2910 = vrcp.f32 %v1042_v11 }
 0x59f   :  { %v2911_v16 = vpop.eup %2910 }
 0x5a0   :  { %v1046_v24 = vmul.f32 %v2911_v16, %v2899_v47 }
 0x5a2   :  { %v1260_v35 = vmul.f32 %v1258_v31, %v1046_v24 }
 0x5a3   :  { %v1039_v43 = vpop.xlane.xlu0 %1038 }
 0x5a7   :  { %v1228_v12 = vpop.xlane.xlu1 %1227 }
 0x5a8   :  { %2912 = vrcp.f32 %v1228_v12 }
 0x5ab   :  { %v1247_v44 = vpop.xlane.xlu0 %1246 }
 0x5ac   :  { %v1250_v15 = vpop.xlane.xlu1 %1249 }
 0x5ad   :  { %2914 = vrcp.f32 %v1250_v15 }
 0x5ae   :  { %2916 = vrcp.f32 %v1039_v43 }
 0x5af   :  { %2918 = vrcp.f32 %v1247_v44  ;;  %v1422_v57 = vpop.permute.xlu0 %1421 }
 0x5b0   :  { %v1500_v42 = vpop.permute.xlu1 %1499 }
 0x5b2   :  { %v2913_v17 = vpop.eup %2912 }
 0x5b3   :  { %v1232_v20 = vmul.f32 %v2913_v17, %v2903_v0  ;;  %v1600_v61 = vpop.permute.xlu0 %1599 }
 0x5b5   :  { %v1263_v32 = vmul.f32 %v1261_v19, %v1232_v20 }
 0x5b7   :  { %v2915_v33 = vpop.eup %2914  ;;  %v1265_v40 = vadd.f32 %v1263_v32, %v1260_v35  ;;  %v1603_v12 = vpop.permute.xlu0 %1602 }
 0x5b8   :  { %v1254_v36 = vmul.f32 %v2915_v33, %v2907_v3  ;;  %v2917_v47 = vpop.eup %2916 }
 0x5b9   :  { %v2919_v49 = vpop.eup %2918  ;;  %v1045_v50 = vmul.f32 %v2917_v47, %v3453_v62 }
 0x5ba   :  { %v1268_v37 = vmul.f32 %v1266_v34, %v1254_v36  ;;  %v1253_v52 = vmul.f32 %v2919_v49, %v2905_v2 }
 0x5bb   :  { %v1259_v55 = vmul.f32 %v1258_v31, %v1045_v50 }
 0x5bc   :  { %v1270_v41 = vadd.f32 %v1268_v37, %v1265_v40  ;;  %v1267_v58 = vmul.f32 %v1266_v34, %v1253_v52 }
 0x5be   :  { %2780 = vmatmul.mubr.msk.f32.vlgmr.msra.gmra.mrb[12].mxu1 %vm306_vm2, %v1270_v41 }
 0x5bf   :  { %2788 = vmatpush3.xpose.msk.msra.mxu1 %vm306_vm2, %v1500_v42  ;;  %2789 = vmatprep.mubr.msk.f32.mxu1 %vm3131_vm1, %v3130_v14 }
 0x5e1   :  { %v1225_v45 = vpop.xlane.xlu1 %1224 }
 0x5e2   :  { %2920 = vrcp.f32 %v1225_v45 }
 0x5e5   :  { %v1420_v46 = vpop.permute.xlu1 %1419 }
 0x5e9   :  { %v1498_v48 = vpop.permute.xlu1 %1497 }
 0x5ea   :  { %2790 = vmatmul.mubr.msk.f32.vlgmr.msra.gmra.mrb[14].mxu1 %vm306_vm2, %v1498_v48 }
 0x5eb   :  { %2799 = vmatprep.mubr.msk.f32.mxu1 %vm306_vm2, %v3337_v27 }
 0x5ec   :  { %v2921_v51 = vpop.eup %2920 }
 0x5ed   :  { %v1231_v53 = vmul.f32 %v2921_v51, %v2909_v9  ;;  %v1681_v54 = vpop.permute.xlu1 %1680 }
 0x5ee   :  { %2797 = vmatprep.subr.mxu1 %v1681_v54 }
 0x5ef   :  { %v1262_v56 = vmul.f32 %v1261_v19, %v1231_v53  ;;  %2798 = vmatpush3.msra.mxu1 %v1681_v54 }
 0x5f0   :  { %2807 = vmatprep.subr.mxu1 %v3130_v14  ;;  %2800 = vmatmul.mubr.msk.f32.vlgmr.msra.gmra.mrb[16].mxu1 %vm306_vm2, %v3346_v29 }
 0x5f1   :  { %2808 = vmatpush3.msra.mxu1 %v1500_v42  ;;  %v1264_v59 = vadd.f32 %v1262_v56, %v1259_v55  ;;  %2809 = vmatprep.mubr.msk.f32.mxu1 %vm3131_vm1, %v3130_v14  ;;  %v1684_v15 = vpop.permute.xlu1 %1683 }
 0x5f2   :  { %2817 = vmatprep.subr.mxu1 %v3130_v14 }
 0x5f3   :  { %v1269_v60 = vadd.f32 %v1267_v58, %v1264_v59 }
 0x5f5   :  { %2775 = vmatmul.mubr.msk.f32.vlgmr.msra.gmra.mrb[12].mxu0 %vm306_vm2, %v1269_v60 }
 0x5f6   :  { %2783 = vmatpush3.xpose.msk.msra.mxu0 %vm306_vm2, %v1422_v57  ;;  %2784 = vmatprep.mubr.msk.f32.mxu0 %vm3131_vm1, %v3130_v14 }
 0x5f7   :  { %2792 = vmatprep.subr.mxu0 %v1600_v61 }
 0x5f9   :  { %2785 = vmatmul.mubr.msk.f32.vlgmr.msra.gmra.mrb[14].mxu0 %vm306_vm2, %v1420_v46 }
 0x5fa   :  { %2793 = vmatpush3.msra.mxu0 %v1600_v61  ;;  %2794 = vmatprep.mubr.msk.f32.mxu0 %vm306_vm2, %v3341_v28 }
 0x5fb   :  { %2802 = vmatprep.subr.mxu0 %v3130_v14 }
 0x5fd   :  { %2795 = vmatmul.mubr.msk.f32.vlgmr.msra.gmra.mrb[16].mxu0 %vm306_vm2, %v3351_v30 }
 0x5fe   :  { %2803 = vmatpush3.msra.mxu0 %v1422_v57  ;;  %2804 = vmatprep.mubr.msk.f32.mxu0 %vm3131_vm1, %v3130_v14 }
 0x5ff   :  { %2812 = vmatprep.subr.mxu0 %v3130_v14 }
 0x691   :  { %v3505_v62 = vpop.f32.mrb[12].mxu1 }
 0x692   :  { %v2781_v63 = vpop.f32.mrb[13].mxu1 }
 0x6bd   :  { %v1571_v0 = vpop.f32.mrb[14].mxu1 }
 0x6be   :  { %v1576_v1 = vmul.f32 0.17677669, %v1571_v0  ;;  %v2791_v2 = vpop.f32.mrb[15].mxu1 }
 0x6c0   :  { %v1580_v3 = vsel %vm306_vm2, %v1576_v1, -inf }
 0x6c1   :  { %1581 = vmax.xlane.f32.xlu0 %v1580_v3 }
 0x6c3   :  { %v2801_v4 = vpop.f32.mrb[16].mxu1 }
 0x6c4   :  { %v1752_v6 = vpop.f32.mrb[17].mxu1  ;;  %v1758_v32 = vadd.f32 %v2801_v4, %v1684_v15 }
 0x6c5   :  { %v1753_v24 = vadd.f32 %v1752_v6, %v1684_v15 }
 0x6c6   :  { %v1786_v36 = vsel %vm306_vm2, %v1758_v32, -inf }
 0x6c7   :  { %v1783_v35 = vsel %vm306_vm2, %v1753_v24, -inf }
 0x6c8   :  { %v3508_v7 = vpop.f32.mrb[12].mxu0 }
 0x6c9   :  { %v2776_v8 = vpop.f32.mrb[13].mxu0 }
 0x6ca   :  { %v1808_v8 = vstv %s3534_s0 }
 0x6cc   :  { %v1493_v9 = vpop.f32.mrb[14].mxu0 }
 0x6cd   :  { %v1575_v10 = vmul.f32 0.17677669, %v1493_v9  ;;  %v2786_v11 = vpop.f32.mrb[15].mxu0 }
 0x6ce   :  { %v1816_v11 = vstv %s3536_s14 }
 0x6cf   :  { %v1577_v16 = vsel %vm306_vm2, %v1575_v10, -inf }
 0x6d0   :  { %1578 = vmax.xlane.f32.xlu0 %v1577_v16  ;;  %v2796_v17 = vpop.f32.mrb[16].mxu0 }
 0x6d1   :  { %v1677_v19 = vadd.f32 %v2796_v17, %v1603_v12  ;;  %v1671_v20 = vpop.f32.mrb[17].mxu0 }
 0x6d2   :  { %v1672_v31 = vadd.f32 %v1671_v20, %v1603_v12 }
 0x6d3   :  { %v1764_v33 = vsel %vm306_vm2, %v1677_v19, -inf }
 0x6d4   :  { %1765 = vmax.xlane.f32.xlu0 %v1764_v33  ;;  %v1761_v34 = vsel %vm306_vm2, %v1672_v31, -inf }
 0x6d5   :  { %1762 = vmax.xlane.f32.xlu1 %v1761_v34 }
 0x6d8   :  { %1784 = vmax.xlane.f32.xlu0 %v1783_v35 }
 0x6d9   :  { %1787 = vmax.xlane.f32.xlu1 %v1786_v36 }
 0x74e   :  { %v1582_v37 = vpop.xlane.xlu0 %1581 }
 0x74f   :  { %v1584_v40 = vsub.f32 %v1576_v1, %v1582_v37 }
 0x751   :  { %v1587_v41 = vmul.f32 1.442695, %v1584_v40 }
 0x753   :  { %2922 = vpow2.f32 %v1587_v41 }
 0x75d   :  { %v2923_v42 = vpop.eup %2922  ;;  %v1579_v43 = vpop.xlane.xlu0 %1578 }
 0x75e   :  { %v1583_v44 = vsub.f32 %v1575_v10, %v1579_v43  ;;  %v1592_v45 = vsel %vm306_vm2, %v2923_v42, 0.0 }
 0x75f   :  { %1593 = vadd.xlane.f32.xlu0 %v1592_v45 }
 0x760   :  { %v1585_v46 = vmul.f32 1.442695, %v1583_v44 }
 0x761   :  { %v1766_v47 = vpop.xlane.xlu0 %1765 }
 0x762   :  { %2924 = vpow2.f32 %v1585_v46  ;;  %v1768_v48 = vsub.f32 %v1677_v19, %v1766_v47  ;;  %v1763_v49 = vpop.xlane.xlu1 %1762 }
 0x763   :  { %v1767_v2 = vsub.f32 %v1672_v31, %v1763_v49 }
 0x764   :  { %v1771_v50 = vmul.f32 1.442695, %v1768_v48 }
 0x765   :  { %v1785_v51 = vpop.xlane.xlu0 %1784  ;;  %v1769_v3 = vmul.f32 1.442695, %v1767_v2 }
 0x766   :  { %2926 = vpow2.f32 %v1771_v50  ;;  %v1789_v52 = vsub.f32 %v1753_v24, %v1785_v51  ;;  %v1788_v53 = vpop.xlane.xlu1 %1787 }
 0x767   :  { %v1790_v54 = vsub.f32 %v1758_v32, %v1788_v53 }
 0x768   :  { %v1791_v55 = vmul.f32 1.442695, %v1789_v52 }
 0x769   :  { %v1793_v56 = vmul.f32 1.442695, %v1790_v54 }
 0x76a   :  { %2928 = vpow2.f32 %v1791_v55 }
 0x76b   :  { %2930 = vpow2.f32 %v1793_v56 }
 0x76c   :  { %v3516_v57 = vpop.eup %2924  ;;  %2932 = vpow2.f32 %v1769_v3 }
 0x76d   :  { %v1589_v58 = vsel %vm306_vm2, %v3516_v57, 0.0 }
 0x76e   :  { %1590 = vadd.xlane.f32.xlu0 %v1589_v58 }
 0x770   :  { %v2927_v59 = vpop.eup %2926 }
 0x771   :  { %v1776_v60 = vsel %vm306_vm2, %v2927_v59, 0.0 }
 0x772   :  { %1777 = vadd.xlane.f32.xlu1 %v1776_v60 }
 0x774   :  { %v2929_v61 = vpop.eup %2928 }
 0x775   :  { %v2931_v63 = vpop.eup %2930  ;;  %v1795_v0 = vsel %vm306_vm2, %v2929_v61, 0.0 }
 0x776   :  { %1796 = vadd.xlane.f32.xlu0 %v1795_v0  ;;  %v1798_v1 = vsel %vm306_vm2, %v2931_v63, 0.0  ;;  %v2933_v4 = vpop.eup %2932 }
 0x777   :  { %1799 = vadd.xlane.f32.xlu1 %v1798_v1  ;;  %v1773_v6 = vsel %vm306_vm2, %v2933_v4, 0.0 }
 0x788   :  { %2049 = vrot.lane.b32.xlu1 %v3313_v18, %s3134_s30 }
 0x78c   :  { %1971 = vrot.lane.b32.xlu0 %v3320_v22, %s3134_s30 }
 0x790   :  { %2149 = vrot.lane.b32.xlu0 %v3327_v25, %s3134_s30 }
 0x794   :  { %2152 = vrot.lane.b32.xlu0 %v3373_v38, %s3134_s30 }
 0x7ac   :  { %1774 = vadd.xlane.f32.xlu1 %v1773_v6 }
 0x7bd   :  { %1969 = vrot.lane.b32.xlu1 %v3331_v26, %s3134_s30 }
 0x7c1   :  { %2047 = vrot.lane.b32.xlu1 %v3322_v23, %s3134_s30 }
 0x7c5   :  { %2230 = vrot.lane.b32.xlu1 %v3318_v21, %s3134_s30  ;;  %v1811_v21 = vstv %s3532_s13 }
 0x7c9   :  { %2233 = vrot.lane.b32.xlu1 %v3378_v39, %s3134_s30 }
 0x7ec   :  { %v1594_v18 = vpop.xlane.xlu0 %1593 }
 0x7ed   :  { %2934 = vrcp.f32 %v1594_v18 }
 0x7f7   :  { %v2935_v23 = vpop.eup %2934 }
 0x7f8   :  { %v1598_v39 = vmul.f32 %v2935_v23, %v2923_v42 }
 0x7fa   :  { %v1810_v12 = vmul.f32 %v1808_v8, %v1598_v39 }
 0x7fb   :  { %v1591_v24 = vpop.xlane.xlu0 %1590 }
 0x7ff   :  { %v1778_v22 = vpop.xlane.xlu1 %1777 }
 0x800   :  { %2936 = vrcp.f32 %v1778_v22 }
 0x803   :  { %v1797_v31 = vpop.xlane.xlu0 %1796 }
 0x804   :  { %v1800_v25 = vpop.xlane.xlu1 %1799 }
 0x805   :  { %2938 = vrcp.f32 %v1800_v25 }
 0x806   :  { %2940 = vrcp.f32 %v1591_v24 }
 0x807   :  { %2942 = vrcp.f32 %v1797_v31  ;;  %v1972_v46 = vpop.permute.xlu0 %1971 }
 0x808   :  { %v2050_v20 = vpop.permute.xlu1 %2049 }
 0x80a   :  { %v2937_v26 = vpop.eup %2936 }
 0x80b   :  { %v1782_v38 = vmul.f32 %v2937_v26, %v2927_v59  ;;  %v2150_v49 = vpop.permute.xlu0 %2149 }
 0x80d   :  { %v1813_v9 = vmul.f32 %v1811_v21, %v1782_v38 }
 0x80f   :  { %v2939_v10 = vpop.eup %2938  ;;  %v1815_v17 = vadd.f32 %v1813_v9, %v1810_v12 }
 0x810   :  { %v1804_v15 = vmul.f32 %v2939_v10, %v2931_v63  ;;  %v2941_v34 = vpop.eup %2940  ;;  %v2153_v63 = vpop.permute.xlu0 %2152 }
 0x811   :  { %v2943_v36 = vpop.eup %2942  ;;  %v1597_v37 = vmul.f32 %v2941_v34, %v3516_v57 }
 0x812   :  { %v1818_v16 = vmul.f32 %v1816_v11, %v1804_v15  ;;  %v1803_v41 = vmul.f32 %v2943_v36, %v2929_v61 }
 0x813   :  { %v1809_v44 = vmul.f32 %v1808_v8, %v1597_v37 }
 0x814   :  { %v1820_v19 = vadd.f32 %v1818_v16, %v1815_v17  ;;  %v1817_v47 = vmul.f32 %v1816_v11, %v1803_v41 }
 0x816   :  { %2810 = vmatmul.mubr.msk.f32.vlgmr.msra.gmra.mrb[18].mxu1 %vm306_vm2, %v1820_v19 }
 0x817   :  { %2818 = vmatpush3.xpose.msk.msra.mxu1 %vm306_vm2, %v2050_v20  ;;  %2819 = vmatprep.mubr.msk.f32.mxu1 %vm3131_vm1, %v3130_v14 }
 0x839   :  { %v1775_v32 = vpop.xlane.xlu1 %1774 }
 0x83a   :  { %2944 = vrcp.f32 %v1775_v32 }
 0x83d   :  { %v1970_v33 = vpop.permute.xlu1 %1969 }
 0x841   :  { %v2048_v35 = vpop.permute.xlu1 %2047 }
 0x842   :  { %2820 = vmatmul.mubr.msk.f32.vlgmr.msra.gmra.mrb[20].mxu1 %vm306_vm2, %v2048_v35 }
 0x843   :  { %2829 = vmatprep.mubr.msk.f32.mxu1 %vm306_vm2, %v3337_v27 }
 0x844   :  { %v2945_v40 = vpop.eup %2944 }
 0x845   :  { %v1781_v42 = vmul.f32 %v2945_v40, %v2933_v4  ;;  %v2231_v43 = vpop.permute.xlu1 %2230 }
 0x846   :  { %2827 = vmatprep.subr.mxu1 %v2231_v43 }
 0x847   :  { %v1812_v45 = vmul.f32 %v1811_v21, %v1781_v42  ;;  %2828 = vmatpush3.msra.mxu1 %v2231_v43 }
 0x848   :  { %2830 = vmatmul.mubr.msk.f32.vlgmr.msra.gmra.mrb[22].mxu1 %vm306_vm2, %v3346_v29  ;;  %2837 = vmatprep.subr.mxu1 %v3130_v14 }
 0x849   :  { %2838 = vmatpush3.msra.mxu1 %v2050_v20  ;;  %v1814_v48 = vadd.f32 %v1812_v45, %v1809_v44  ;;  %2839 = vmatprep.mubr.msk.f32.mxu1 %vm3131_vm1, %v3130_v14  ;;  %v2234_v55 = vpop.permute.xlu1 %2233 }
 0x84b   :  { %v1819_v27 = vadd.f32 %v1817_v47, %v1814_v48 }
 0x84d   :  { %2805 = vmatmul.mubr.msk.f32.vlgmr.msra.gmra.mrb[18].mxu0 %vm306_vm2, %v1819_v27 }
 0x84e   :  { %2813 = vmatpush3.xpose.msk.msra.mxu0 %vm306_vm2, %v1972_v46  ;;  %2814 = vmatprep.mubr.msk.f32.mxu0 %vm3131_vm1, %v3130_v14 }
 0x84f   :  { %2822 = vmatprep.subr.mxu0 %v2150_v49 }
 0x851   :  { %2815 = vmatmul.mubr.msk.f32.vlgmr.msra.gmra.mrb[20].mxu0 %vm306_vm2, %v1970_v33 }
 0x852   :  { %2823 = vmatpush3.msra.mxu0 %v2150_v49  ;;  %2824 = vmatprep.mubr.msk.f32.mxu0 %vm306_vm2, %v3341_v28 }
 0x853   :  { %2832 = vmatprep.subr.mxu0 %v3130_v14 }
 0x855   :  { %2825 = vmatmul.mubr.msk.f32.vlgmr.msra.gmra.mrb[22].mxu0 %vm306_vm2, %v3351_v30 }
 0x856   :  { %2833 = vmatpush3.msra.mxu0 %v1972_v46  ;;  %2834 = vmatprep.mubr.msk.f32.mxu0 %vm3131_vm1, %v3130_v14 }
 0x8e9   :  { %v3566_v29 = vpop.f32.mrb[18].mxu1 }
 0x8ea   :  { %v2811_v50 = vpop.f32.mrb[19].mxu1 }
 0x915   :  { %v2121_v51 = vpop.f32.mrb[20].mxu1 }
 0x916   :  { %v2126_v52 = vmul.f32 0.17677669, %v2121_v51  ;;  %v2821_v53 = vpop.f32.mrb[21].mxu1 }
 0x918   :  { %v2130_v54 = vsel %vm306_vm2, %v2126_v52, -inf }
 0x919   :  { %2131 = vmax.xlane.f32.xlu1 %v2130_v54 }
 0x91b   :  { %v2831_v28 = vpop.f32.mrb[22].mxu1 }
 0x91c   :  { %v2308_v56 = vadd.f32 %v2831_v28, %v2234_v55  ;;  %v2302_v57 = vpop.f32.mrb[23].mxu1 }
 0x91d   :  { %v2303_v18 = vadd.f32 %v2302_v57, %v2234_v55  ;;  %v2358_v55 = vstv %s2627_s3  ;;  %v2366_v57 = vstv %s2629_s26 }
 0x91e   :  { %v2336_v58 = vsel %vm306_vm2, %v2308_v56, -inf }
 0x91f   :  { %2337 = vmax.xlane.f32.xlu1 %v2336_v58  ;;  %v2333_v25 = vsel %vm306_vm2, %v2303_v18, -inf }
 0x920   :  { %v1891_v30 = vpop.f32.mrb[18].mxu0 }
 0x921   :  { %v2806_v59 = vpop.f32.mrb[19].mxu0 }
 0x924   :  { %v2043_v60 = vpop.f32.mrb[20].mxu0 }
 0x925   :  { %v2125_v14 = vmul.f32 0.17677669, %v2043_v60  ;;  %v2816_v61 = vpop.f32.mrb[21].mxu0 }
 0x927   :  { %v2127_v0 = vsel %vm306_vm2, %v2125_v14, -inf }
 0x928   :  { %2128 = vmax.xlane.f32.xlu0 %v2127_v0  ;;  %v2826_v1 = vpop.f32.mrb[22].mxu0 }
 0x929   :  { %v2227_v2 = vadd.f32 %v2826_v1, %v2153_v63  ;;  %v2221_v3 = vpop.f32.mrb[23].mxu0 }
 0x92a   :  { %v2222_v4 = vadd.f32 %v2221_v3, %v2153_v63 }
 0x92b   :  { %v2314_v6 = vsel %vm306_vm2, %v2227_v2, -inf }
 0x92c   :  { %2315 = vmax.xlane.f32.xlu0 %v2314_v6  ;;  %v2311_v22 = vsel %vm306_vm2, %v2222_v4, -inf }
 0x930   :  { %2312 = vmax.xlane.f32.xlu0 %v2311_v22 }
 0x934   :  { %2334 = vmax.xlane.f32.xlu0 %v2333_v25 }
 0x9a6   :  { %v2132_v23 = vpop.xlane.xlu1 %2131 }
 0x9a7   :  { %v2134_v26 = vsub.f32 %v2126_v52, %v2132_v23  ;;  %v2361_v52 = vstv %s2628_s18 }
 0x9a9   :  { %v2137_v21 = vmul.f32 1.442695, %v2134_v26 }
 0x9ab   :  { %2946 = vpow2.f32 %v2137_v21 }
 0x9ac   :  { %v2338_v39 = vpop.xlane.xlu1 %2337 }
 0x9ad   :  { %v2340_v11 = vsub.f32 %v2308_v56, %v2338_v39 }
 0x9af   :  { %v2343_v17 = vmul.f32 1.442695, %v2340_v11 }
 0x9b5   :  { %v2947_v38 = vpop.eup %2946  ;;  %v2129_v8 = vpop.xlane.xlu0 %2128 }
 0x9b6   :  { %v2133_v9 = vsub.f32 %v2125_v14, %v2129_v8  ;;  %v2142_v10 = vsel %vm306_vm2, %v2947_v38, 0.0 }
 0x9b7   :  { %2143 = vadd.xlane.f32.xlu1 %v2142_v10 }
 0x9b8   :  { %v2135_v12 = vmul.f32 1.442695, %v2133_v9 }
 0x9b9   :  { %v2316_v15 = vpop.xlane.xlu0 %2315 }
 0x9ba   :  { %2948 = vpow2.f32 %v2135_v12  ;;  %v2318_v16 = vsub.f32 %v2227_v2, %v2316_v15 }
 0x9bc   :  { %v2321_v19 = vmul.f32 1.442695, %v2318_v16 }
 0x9bd   :  { %v2313_v20 = vpop.xlane.xlu0 %2312 }
 0x9be   :  { %2950 = vpow2.f32 %v2321_v19  ;;  %v2317_v24 = vsub.f32 %v2222_v4, %v2313_v20 }
 0x9bf   :  { %2952 = vpow2.f32 %v2343_v17 }
 0x9c0   :  { %v2319_v31 = vmul.f32 1.442695, %v2317_v24 }
 0x9c1   :  { %v2335_v32 = vpop.xlane.xlu0 %2334 }
 0x9c2   :  { %2954 = vpow2.f32 %v2319_v31  ;;  %v2339_v33 = vsub.f32 %v2303_v18, %v2335_v32 }
 0x9c4   :  { %v2949_v34 = vpop.eup %2948  ;;  %v2341_v35 = vmul.f32 1.442695, %v2339_v33 }
 0x9c5   :  { %v2139_v36 = vsel %vm306_vm2, %v2949_v34, 0.0 }
 0x9c6   :  { %2956 = vpow2.f32 %v2341_v35  ;;  %2140 = vadd.xlane.f32.xlu0 %v2139_v36 }
 0x9c8   :  { %v2951_v37 = vpop.eup %2950 }
 0x9c9   :  { %v2326_v40 = vsel %vm306_vm2, %v2951_v37, 0.0  ;;  %v2953_v41 = vpop.eup %2952 }
 0x9ca   :  { %2327 = vadd.xlane.f32.xlu1 %v2326_v40  ;;  %v2348_v43 = vsel %vm306_vm2, %v2953_v41, 0.0 }
 0x9cc   :  { %v2955_v42 = vpop.eup %2954 }
 0x9cd   :  { %v2323_v44 = vsel %vm306_vm2, %v2955_v42, 0.0 }
 0x9ce   :  { %2349 = vadd.xlane.f32.xlu1 %v2348_v43  ;;  %2324 = vadd.xlane.f32.xlu0 %v2323_v44 }
 0x9d0   :  { %v2957_v45 = vpop.eup %2956 }
 0x9d1   :  { %v2345_v46 = vsel %vm306_vm2, %v2957_v45, 0.0 }
 0x9d2   :  { %2346 = vadd.xlane.f32.xlu0 %v2345_v46 }
 0x9df   :  { %2523 = vrot.lane.b32.xlu1 %v3505_v62, %s3125_s16 }
 0x9e3   :  { %2529 = vrot.lane.b32.xlu1 %v1891_v30, %s3135_s17 }
 0x9e7   :  { %2531 = vrot.lane.b32.xlu1 %v3566_v29, %s3135_s17 }
 0x9e8   :  { %2521 = vrot.lane.b32.xlu0 %v3508_v7, %s3125_s16 }
 0xa44   :  { %v2144_v47 = vpop.xlane.xlu1 %2143 }
 0xa45   :  { %2958 = vrcp.f32 %v2144_v47 }
 0xa4f   :  { %v2959_v51 = vpop.eup %2958 }
 0xa50   :  { %v2148_v53 = vmul.f32 %v2959_v51, %v2947_v38 }
 0xa52   :  { %v2360_v30 = vmul.f32 %v2358_v55, %v2148_v53 }
 0xa53   :  { %v2141_v48 = vpop.xlane.xlu0 %2140 }
 0xa57   :  { %v2328_v27 = vpop.xlane.xlu1 %2327 }
 0xa58   :  { %2960 = vrcp.f32 %v2328_v27 }
 0xa59   :  { %2962 = vrcp.f32 %v2141_v48 }
 0xa5b   :  { %v2350_v49 = vpop.xlane.xlu1 %2349  ;;  %v2325_v50 = vpop.xlane.xlu0 %2324 }
 0xa5c   :  { %2964 = vrcp.f32 %v2350_v49 }
 0xa5d   :  { %2966 = vrcp.f32 %v2325_v50 }
 0xa5f   :  { %v2347_v62 = vpop.xlane.xlu0 %2346  ;;  %v2524_v38 = vpop.permute.xlu1 %2523 }
 0xa60   :  { %2968 = vrcp.f32 %v2347_v62  ;;  %v2544_v10 = vsel %vm306_vm2, %v3442_v5, %v2524_v38 }
 0xa62   :  { %v2961_v29 = vpop.eup %2960 }
 0xa63   :  { %v2332_v7 = vmul.f32 %v2961_v29, %v2951_v37  ;;  %v2963_v54 = vpop.eup %2962  ;;  %v2530_v39 = vpop.permute.xlu1 %2529 }
 0xa64   :  { %v2147_v59 = vmul.f32 %v2963_v54, %v2949_v34  ;;  %v2522_v9 = vpop.permute.xlu0 %2521 }
 0xa65   :  { %v2363_v28 = vmul.f32 %v2361_v52, %v2332_v7  ;;  %v2543_v15 = vsel %vm306_vm2, %v3445_v13, %v2522_v9 }
 0xa66   :  { %v2965_v56 = vpop.eup %2964  ;;  %v2359_v2 = vmul.f32 %v2358_v55, %v2147_v59  ;;  %v2546_v17 = vsel %vm2545_vm4, %v2543_v15, %v2530_v39 }
 0xa67   :  { %v2967_v58 = vpop.eup %2966  ;;  %v2354_v60 = vmul.f32 %v2965_v56, %v2953_v41  ;;  %v2365_v63 = vadd.f32 %v2363_v28, %v2360_v30  ;;  %v2532_v8 = vpop.permute.xlu1 %2531 }
 0xa68   :  { %v2331_v14 = vmul.f32 %v2967_v58, %v2955_v42  ;;  %v2547_v11 = vsel %vm2545_vm4, %v2544_v10, %v2532_v8 }
 0xa69   :  { %v2368_v61 = vmul.f32 %v2366_v57, %v2354_v60 }
 0xa6a   :  { %v2969_v0 = vpop.eup %2968  ;;  %v2362_v1 = vmul.f32 %v2361_v52, %v2331_v14 }
 0xa6b   :  { %v2353_v3 = vmul.f32 %v2969_v0, %v2957_v45  ;;  %v2370_v4 = vadd.f32 %v2368_v61, %v2365_v63 }
 0xa6c   :  { %v2364_v18 = vadd.f32 %v2362_v1, %v2359_v2 }
 0xa6d   :  { %v2367_v6 = vmul.f32 %v2366_v57, %v2353_v3  ;;  %2840 = vmatmul.mubr.msk.f32.vlgmr.msra.gmra.mrb[24].mxu1 %vm306_vm2, %v2370_v4 }
 0xa6f   :  { %v2369_v22 = vadd.f32 %v2367_v6, %v2364_v18 }
 0xa71   :  { %2835 = vmatmul.mubr.msk.f32.vlgmr.msra.gmra.mrb[24].mxu0 %vm306_vm2, %v2369_v22 }
 0xb40   :  { %v2515_v25 = vpop.f32.mrb[24].mxu1 }
 0xb41   :  { %2539 = vrot.lane.b32.xlu1 %v2515_v25, %s3136_s6  ;;  %v2841_v23 = vpop.f32.mrb[25].mxu1 }
 0xb44   :  { %v2441_v26 = vpop.f32.mrb[24].mxu0 }
 0xb45   :  { %2537 = vrot.lane.b32.xlu0 %v2441_v26, %s3136_s6  ;;  %v2836_v21 = vpop.f32.mrb[25].mxu0 }
 0xbb3   :  { %v2540_v12 = vpop.permute.xlu1 %2539 }
 0xbb4   :  { %v2550_v16 = vsel %vm2548_vm3, %v2547_v11, %v2540_v12 }
 0xbb5   :  { %2552 = vst.msk [vmem:[#allocation13 + $0x8] sm:$0xff] %vm138_vm0, %v2550_v16 }
 0xbb7   :  { %v2538_v19 = vpop.permute.xlu0 %2537 }
 0xbb8   :  { %v2549_v20 = vsel %vm2548_vm3, %v2546_v17, %v2538_v19 }
 0xbb9   :  { %2551 = vst.msk [vmem:[#allocation13] sm:$0xff] %vm138_vm0, %v2549_v20 }
 0xbba   :  { %3101 = shalt.err (!%p3098_p5)
}
 0xbbb   :  { %s3102_s7 = scalar_lea.hbm %s3620_s12, 256 }
 0xbbc   :  { %p3103_p6 = scmp.ne.s32.totalorder %s3620_s12, %s3102_s7  ;;  %p3106_p7 = scmp.lt.u32.totalorder %s3102_s7, %s3620_s12 }
 0xbbe   :  { %p3108_p8 = pnand %p3106_p7, %p3103_p6 }
 0xbc0   :  { %3111 = shalt.err (!%p3108_p8)
}
 0xbc1   :  { %2564 = dma.vmem_to_hbm [thread:$0]  %s2559_s20, 256, %s3620_s12, [#allocation4], %s3124_s15, %s3124_s15, %s3125_s16  }
 0xbc2   :  { %3120 = dma.done.wait [#allocation4], 256  }
 0xbc3   :  { %3121 = vsyncadd [#allocation4], 4294967040 }
 0xbc4   :  { %2568 = vsyncpa [#allocation3], 1 }
 0xbc5   :  { %2569 = vsyncpa [#allocation8], 1 }
 0xbc6   :  { %2570 = vsyncpa [#allocation11], 1 }
 0xbc7   :  { %2571 = vsyncpa [#allocation4], 1 }
 0xbc8   :  { %2572 = vsyncpa [#allocation5], 1 }

</bundles_post_ra>
